<compile_context>
chip_gen: v6e
topology: v6e:2x2x1
jax: 0.10.0
libtpu: 0.0.40
codegen_flags: <defaults>
</compile_context>

<pallas_src>
import functools

import jax
import jax.numpy as jnp
from jax import lax
from jax.experimental import pallas as pl
from jax.experimental.pallas import tpu as pltpu

EPS = 1e-5  # InstanceNorm3d default eps


def _round_up(x, m):
    return (x + m - 1) // m * m


def _pick_tile(q_len, cin_p, cout, halo, budget_bytes=10 << 20):
    """Largest 128-multiple tile that fits a conservative VMEM budget and keeps >=2 tiles."""
    kt_p = 27 * cin_p
    for cand in (2048, 1024, 512, 256, 128):
        slab_l = _round_up(cand + halo, 128)
        vmem = 4 * (kt_p * cand                # fused im2col patch
                    + 2 * cin_p * slab_l       # double-buffered halo slab
                    + 2 * cout * kt_p          # weight block (pipeline-buffered)
                    + 2 * (cout + 1) * cand    # y tile + mask tile (pipeline-buffered)
                    + 8 * cout)                # per-channel stats
        if vmem <= budget_bytes and (pl.cdiv(q_len, cand) >= 2 or cand == 128):
            return cand
    return 128


def _conv_kernel(x_hbm, w_ref, m_ref, y_ref, sh_ref, sc_ref,
                 slab_buf, patch_buf, sem,
                 *, ts, slab_l, cin_p, tap_offsets, n_tiles, inv_count):
    # x_hbm:   (N, Cin_p, E) in HBM (manual DMA)        w_ref: (Cout, 27*Cin_p)
    # m_ref:   (1, TS) validity mask                     y_ref: (1, Cout, TS)
    # sh_ref / sc_ref: (1, Cout, 1) accumulators -> finalized to shift / scale.
    n = pl.program_id(0)
    j = pl.program_id(1)
    slot = j % 2

    def slab_copy(nn, jj, sl):
        start = pl.multiple_of(jj * ts, 128)
        return pltpu.make_async_copy(
            x_hbm.at[nn, :, pl.ds(start, slab_l)],
            slab_buf.at[sl],
            sem.at[sl])

    # Prime the DMA pipeline at the first tile of every sample.
    @pl.when(j == 0)
    def _():
        slab_copy(n, 0, 0).start()

    # Wait for the current tile's slab.
    slab_copy(n, j, slot).wait()

    # Prefetch the next tile of this sample while we compute (double buffering).
    @pl.when(j + 1 < n_tiles)
    def _():
        slab_copy(n, j + 1, 1 - slot).start()

    # Pack the 27 shifted taps into one fused im2col patch: K = 27*Cin_p.
    # Ref-view (no full-slab load); each slice loads only the (Cin_p, TS) window.
    slab = slab_buf.at[slot]
    for t, off in enumerate(tap_offsets):
        patch_buf[t * cin_p:(t + 1) * cin_p, :] = slab[:, off:off + ts]

    # Single MXU matmul per tile: (Cout, 27*Cin_p) @ (27*Cin_p, TS).
    y = jnp.dot(w_ref[...], patch_buf[...],
                preferred_element_type=jnp.float32)          # (Cout, TS)
    y_ref[0] = y

    # Per-channel running sum / sum-of-squares over valid voxels only.
    @pl.when(j == 0)
    def _():
        sh_ref[...] = jnp.zeros_like(sh_ref)
        sc_ref[...] = jnp.zeros_like(sc_ref)

    ym = y * m_ref[...]                                      # mask broadcasts over channels
    sh_ref[...] += jnp.sum(ym, axis=1, keepdims=True)[None]
    sc_ref[...] += jnp.sum(ym * y, axis=1, keepdims=True)[None]

    # Finalize: fold sums into per-channel (shift, scale) so pass 2 is a pure FMA.
    @pl.when(j == n_tiles - 1)
    def _():
        mean = sh_ref[...] * inv_count
        var = sc_ref[...] * inv_count - mean * mean          # E[y^2] - mean^2
        scale = lax.rsqrt(var + EPS)                         # EUP
        sc_ref[...] = scale
        sh_ref[...] = -mean * scale


def _norm_kernel(y_ref, sh_ref, sc_ref, a_ref, o_ref):
    # y_ref: (1, Cout, TS)   sh/sc: (1, Cout, 1)   a_ref: (1,) in SMEM
    y = y_ref[0] * sc_ref[0] + sh_ref[0]                     # (y - mean) * rstd
    a = a_ref[0]                                             # PReLU scalar (SMEM)
    o_ref[0] = jnp.where(y >= 0, y, y * a).astype(o_ref.dtype)


def conv_block_forward(x_ncdhw, weight_oidhw, bias, prelu_a, *, ts=None):
    """Conv3d(k=3, s=1, p=1) -> InstanceNorm3d(affine=False) -> PReLU.  NCDHW in/out."""
    N, Cin, D, H, W = x_ncdhw.shape
    Cout = weight_oidhw.shape[0]
    Dp, Hp, Wp = D + 2, H + 2, W + 2
    hpwp = Hp * Wp
    cin_p = _round_up(Cin, 8)            # pad channels to the sublane tile
    kt_p = 27 * cin_p                    # fused contraction size

    q_len = D * hpwp                     # flattened (interior-depth, padded-HW) positions
    halo = 2 * hpwp + 2 * Wp + 2         # max tap offset
    if ts is None:
        ts = _pick_tile(q_len, cin_p, Cout, halo)
    assert ts % 128 == 0
    q_pad = _round_up(q_len, ts)
    n_tiles = q_pad // ts
    slab_l = _round_up(ts + halo, 128)
    ext_len = (n_tiles - 1) * ts + slab_l
    front = Wp + 1
    assert ext_len >= front + Dp * hpwp

    # ---- glue (plain XLA): pad + flatten once; no 27x im2col materialization ----
    xp = jnp.pad(x_ncdhw.astype(jnp.float32),
                 ((0, 0), (0, cin_p - Cin), (1, 1), (1, 1), (1, 1)))
    x_flat = xp.reshape(N, cin_p, Dp * hpwp)
    x_ext = jnp.pad(x_flat, ((0, 0), (0, 0), (front, ext_len - front - Dp * hpwp)))

    # Weight (Cout, Cin, 3,3,3) -> (Cout, 27*Cin_p), K ordered as (kd, kh, kw, cin).
    w_t = jnp.transpose(weight_oidhw.astype(jnp.float32), (0, 2, 3, 4, 1))
    w_t = jnp.pad(w_t, ((0, 0), (0, 0), (0, 0), (0, 0), (0, cin_p - Cin)))
    w_mat = w_t.reshape(Cout, kt_p)
    # NOTE: `bias` is intentionally unused: a per-channel bias cancels exactly under
    # InstanceNorm3d(affine=False).
    del bias

    # Validity mask over the flattened q axis (1 = interior voxel, 0 = border / tail pad).
    q = jnp.arange(q_pad, dtype=jnp.int32)
    hh = (q % hpwp) // Wp
    ww = q % Wp
    valid = (q < q_len) & (hh >= 1) & (hh <= H) & (ww >= 1) & (ww <= W)
    mask = valid.astype(jnp.float32).reshape(1, q_pad)

    tap_offsets = tuple(kd * hpwp + kh * Wp + kw
                        for kd in range(3) for kh in range(3) for kw in range(3))

    conv_kernel = functools.partial(
        _conv_kernel, ts=ts, slab_l=slab_l, cin_p=cin_p,
        tap_offsets=tap_offsets, n_tiles=n_tiles,
        inv_count=1.0 / float(D * H * W))

    flops1 = 2 * N * q_pad * kt_p * Cout
    bytes1 = 4 * (x_ext.size + w_mat.size + mask.size + N * Cout * (q_pad + 2))

    y_conv, shift, scale = pl.pallas_call(
        conv_kernel,
        out_shape=(
            jax.ShapeDtypeStruct((N, Cout, q_pad), jnp.float32),
            jax.ShapeDtypeStruct((N, Cout, 1), jnp.float32),
            jax.ShapeDtypeStruct((N, Cout, 1), jnp.float32),
        ),
        grid_spec=pltpu.PrefetchScalarGridSpec(
            num_scalar_prefetch=0,
            grid=(N, n_tiles),
            in_specs=[
                pl.BlockSpec(memory_space=pl.ANY),                  # x_ext: manual DMA
                pl.BlockSpec((Cout, kt_p), lambda n, j: (0, 0)),    # fused weight
                pl.BlockSpec((1, ts), lambda n, j: (0, j)),         # validity mask
            ],
            out_specs=(
                pl.BlockSpec((1, Cout, ts), lambda n, j: (n, 0, j)),
                pl.BlockSpec((1, Cout, 1), lambda n, j: (n, 0, 0)),
                pl.BlockSpec((1, Cout, 1), lambda n, j: (n, 0, 0)),
            ),
            scratch_shapes=[
                pltpu.VMEM((2, cin_p, slab_l), jnp.float32),        # double-buffered slab
                pltpu.VMEM((kt_p, ts), jnp.float32),                # fused im2col patch
                pltpu.SemaphoreType.DMA((2,)),
            ],
        ),
        compiler_params=pltpu.CompilerParams(
            dimension_semantics=("parallel", "arbitrary")),
        cost_estimate=pl.CostEstimate(
            flops=int(flops1), transcendentals=int(N * Cout),
            bytes_accessed=int(bytes1)),
    )(x_ext, w_mat, mask)

    out_flat = pl.pallas_call(
        _norm_kernel,
        out_shape=jax.ShapeDtypeStruct((N, Cout, q_pad), x_ncdhw.dtype),
        grid_spec=pltpu.PrefetchScalarGridSpec(
            num_scalar_prefetch=0,
            grid=(N, n_tiles),
            in_specs=[
                pl.BlockSpec((1, Cout, ts), lambda n, j: (n, 0, j)),
                pl.BlockSpec((1, Cout, 1), lambda n, j: (n, 0, 0)),
                pl.BlockSpec((1, Cout, 1), lambda n, j: (n, 0, 0)),
                pl.BlockSpec(memory_space=pltpu.MemorySpace.SMEM),  # PReLU scalar
            ],
            out_specs=pl.BlockSpec((1, Cout, ts), lambda n, j: (n, 0, j)),
        ),
        compiler_params=pltpu.CompilerParams(
            dimension_semantics=("parallel", "parallel")),
        cost_estimate=pl.CostEstimate(
            flops=int(4 * N * Cout * q_pad),
            transcendentals=0,
            bytes_accessed=int(8 * N * Cout * q_pad)),
    )(y_conv, shift, scale, jnp.asarray(prelu_a, jnp.float32).reshape(1))

    # Outputs are already in (N, Cout, D, Hp, Wp) order; drop padded H/W borders.
    out = out_flat[:, :, :q_len].reshape(N, Cout, D, Hp, Wp)
    return out[:, :, :, 1:H + 1, 1:W + 1]


def reference_forward(x, weight, bias, a):
    y = lax.conv_general_dilated(
        x, weight, window_strides=(1, 1, 1),
        padding=((1, 1), (1, 1), (1, 1)),
        dimension_numbers=("NCDHW", "OIDHW", "NCDHW"))
    y = y + bias[None, :, None, None, None]
    mean = jnp.mean(y, axis=(2, 3, 4), keepdims=True)
    var = jnp.mean((y - mean) ** 2, axis=(2, 3, 4), keepdims=True)
    y = (y - mean) * lax.rsqrt(var + EPS)
    return jnp.where(y >= 0, y, a * y)


if __name__ == "__main__":
    # Small shapes consistent with a Conv3d block.
    N, Cin, Cout = 2, 4, 8
    D = H = W = 8

    key = jax.random.PRNGKey(0)
    kx, kw, kb = jax.random.split(key, 3)

    x = jax.random.normal(kx, (N, Cin, D, H, W), dtype=jnp.float32)
    # Conv3d weight: (out_channels, in_channels, kD, kH, kW)
    weight = jax.random.normal(kw, (Cout, Cin, 3, 3, 3), dtype=jnp.float32) * 0.1
    bias = jax.random.normal(kb, (Cout,), dtype=jnp.float32) * 0.1
    prelu_a = jnp.float32(0.25)  # nn.PReLU() default init

    out = jax.block_until_ready(conv_block_forward(x, weight, bias, prelu_a))
    ref = jax.block_until_ready(reference_forward(x, weight, bias, prelu_a))

    assert out.shape == (N, Cout, D, H, W)
    assert jnp.allclose(out, ref, rtol=1e-4, atol=1e-4), \
        float(jnp.max(jnp.abs(out - ref)))

    print("KERNEL_OK")
</pallas_src>

<mosaic_0001>
module attributes {stable_mosaic.version = 11 : i64} {
  func.func @_conv_kernel(%arg0: i32, %arg1: i32, %arg2: memref<2x8x1280xf32, #tpu.memory_space<any>>, %arg3: memref<8x216xf32, #tpu.memory_space<vmem>>, %arg4: memref<1x512xf32, #tpu.memory_space<vmem>>, %arg5: memref<1x8x512xf32, #tpu.memory_space<vmem>>, %arg6: memref<1x8x1xf32, #tpu.memory_space<vmem>>, %arg7: memref<1x8x1xf32, #tpu.memory_space<vmem>>, %arg8: memref<2x8x768xf32, #tpu.memory_space<vmem>>, %arg9: memref<216x512xf32, #tpu.memory_space<vmem>>, %arg10: memref<2x!tpu.dma_semaphore, #tpu.memory_space<semaphore_mem>>) attributes {dimension_semantics = [#tpu.dimension_semantics<parallel>, #tpu.dimension_semantics<arbitrary>], iteration_bounds = array<i64: 2, 2>, scalar_prefetch = 0 : i64, scratch_operands = 3 : i64, tpu.core_type = #tpu.core_type<tc>, window_params = [{}, {pipeline_mode = #tpu.pipeline_mode<synchronous>, transform_indices = @transform_1, window_bounds = array<i64: 8, 216>}, {transform_indices = @transform_2, window_bounds = array<i64: 1, 512>}, {transform_indices = @transform_3, window_bounds = array<i64: 1, 8, 512>}, {transform_indices = @transform_4, window_bounds = array<i64: 1, 8, 1>}, {transform_indices = @transform_5, window_bounds = array<i64: 1, 8, 1>}]} {
    %c2_i32 = arith.constant 2 : i32
    %c0_i32 = arith.constant 0 : i32
    %0 = arith.cmpi eq, %c2_i32, %c0_i32 : i32
    %c1_i32 = arith.constant 1 : i32
    %1 = arith.select %0, %c1_i32, %c2_i32 : i32
    %2 = arith.remsi %arg1, %1 : i32
    %c0_i32_0 = arith.constant 0 : i32
    %3 = arith.cmpi ne, %2, %c0_i32_0 : i32
    %c0_i32_1 = arith.constant 0 : i32
    %4 = arith.cmpi slt, %2, %c0_i32_1 : i32
    %c0_i32_2 = arith.constant 0 : i32
    %5 = arith.cmpi slt, %1, %c0_i32_2 : i32
    %6 = arith.xori %4, %5 : i1
    %7 = arith.andi %6, %3 : i1
    %8 = arith.addi %2, %1 : i32
    %9 = arith.select %7, %8, %2 : i32
    %c0_i32_3 = arith.constant 0 : i32
    %10 = arith.cmpi eq, %arg1, %c0_i32_3 : i32
    %11 = arith.extui %10 : i1 to i32
    %c0_i32_4 = arith.constant 0 : i32
    %12 = arith.cmpi ne, %11, %c0_i32_4 : i32
    scf.if %12 {
      %c0_i32_150 = arith.constant 0 : i32
      %161 = tpu.assume_multiple %c0_i32_150, 128 : i32
      %c0_i32_151 = arith.constant 0 : i32
      %c0_i32_152 = arith.constant 0 : i32
      %c0_i32_153 = arith.constant 0 : i32
      %162 = tpu.memref_slice %arg2[%arg0, %c0_i32_153, %161] : memref<2x8x1280xf32, #tpu.memory_space<any>> -> memref<1x8x768xf32, #tpu.memory_space<any>>
      %163 = tpu.memref_squeeze %162 : memref<1x8x768xf32, #tpu.memory_space<any>> -> memref<8x768xf32, #tpu.memory_space<any>>
      %c0_i32_154 = arith.constant 0 : i32
      %c0_i32_155 = arith.constant 0 : i32
      %164 = tpu.memref_slice %arg8[%c0_i32_151, %c0_i32_154, %c0_i32_155] : memref<2x8x768xf32, #tpu.memory_space<vmem>> -> memref<1x8x768xf32, #tpu.memory_space<vmem>>
      %165 = tpu.memref_squeeze %164 : memref<1x8x768xf32, #tpu.memory_space<vmem>> -> memref<8x768xf32, #tpu.memory_space<vmem>>
      %166 = tpu.memref_slice %arg10[%c0_i32_152] : memref<2x!tpu.dma_semaphore, #tpu.memory_space<semaphore_mem>> -> memref<1x!tpu.dma_semaphore, #tpu.memory_space<semaphore_mem>>
      %167 = tpu.memref_squeeze %166 : memref<1x!tpu.dma_semaphore, #tpu.memory_space<semaphore_mem>> -> memref<!tpu.dma_semaphore, #tpu.memory_space<semaphore_mem>>
      tpu.enqueue_dma source(%163 : memref<8x768xf32, #tpu.memory_space<any>>) target(%165 : memref<8x768xf32, #tpu.memory_space<vmem>>) target_semaphore(%167 : memref<!tpu.dma_semaphore, #tpu.memory_space<semaphore_mem>>)
    } else {
    }
    %c512_i32 = arith.constant 512 : i32
    %13 = arith.muli %arg1, %c512_i32 : i32
    %14 = tpu.assume_multiple %13, 128 : i32
    %c0_i32_5 = arith.constant 0 : i32
    %15 = tpu.memref_slice %arg2[%arg0, %c0_i32_5, %14] : memref<2x8x1280xf32, #tpu.memory_space<any>> -> memref<1x8x768xf32, #tpu.memory_space<any>>
    %16 = tpu.memref_squeeze %15 : memref<1x8x768xf32, #tpu.memory_space<any>> -> memref<8x768xf32, #tpu.memory_space<any>>
    %c0_i32_6 = arith.constant 0 : i32
    %c0_i32_7 = arith.constant 0 : i32
    %17 = tpu.memref_slice %arg8[%9, %c0_i32_6, %c0_i32_7] : memref<2x8x768xf32, #tpu.memory_space<vmem>> -> memref<1x8x768xf32, #tpu.memory_space<vmem>>
    %18 = tpu.memref_squeeze %17 : memref<1x8x768xf32, #tpu.memory_space<vmem>> -> memref<8x768xf32, #tpu.memory_space<vmem>>
    %19 = tpu.memref_slice %arg10[%9] : memref<2x!tpu.dma_semaphore, #tpu.memory_space<semaphore_mem>> -> memref<1x!tpu.dma_semaphore, #tpu.memory_space<semaphore_mem>>
    %20 = tpu.memref_squeeze %19 : memref<1x!tpu.dma_semaphore, #tpu.memory_space<semaphore_mem>> -> memref<!tpu.dma_semaphore, #tpu.memory_space<semaphore_mem>>
    tpu.wait_dma2 semaphore(%20 : memref<!tpu.dma_semaphore, #tpu.memory_space<semaphore_mem>>) src(%16 : memref<8x768xf32, #tpu.memory_space<any>>) dst(%18 : memref<8x768xf32, #tpu.memory_space<vmem>>)
    %c1_i32_8 = arith.constant 1 : i32
    %21 = arith.addi %arg1, %c1_i32_8 : i32
    %c2_i32_9 = arith.constant 2 : i32
    %22 = arith.cmpi slt, %21, %c2_i32_9 : i32
    %23 = arith.extui %22 : i1 to i32
    %c0_i32_10 = arith.constant 0 : i32
    %24 = arith.cmpi ne, %23, %c0_i32_10 : i32
    scf.if %24 {
      %c1_i32_150 = arith.constant 1 : i32
      %161 = arith.addi %arg1, %c1_i32_150 : i32
      %c1_i32_151 = arith.constant 1 : i32
      %162 = arith.subi %c1_i32_151, %9 : i32
      %c512_i32_152 = arith.constant 512 : i32
      %163 = arith.muli %161, %c512_i32_152 : i32
      %164 = tpu.assume_multiple %163, 128 : i32
      %c0_i32_153 = arith.constant 0 : i32
      %165 = tpu.memref_slice %arg2[%arg0, %c0_i32_153, %164] : memref<2x8x1280xf32, #tpu.memory_space<any>> -> memref<1x8x768xf32, #tpu.memory_space<any>>
      %166 = tpu.memref_squeeze %165 : memref<1x8x768xf32, #tpu.memory_space<any>> -> memref<8x768xf32, #tpu.memory_space<any>>
      %c0_i32_154 = arith.constant 0 : i32
      %c0_i32_155 = arith.constant 0 : i32
      %167 = tpu.memref_slice %arg8[%162, %c0_i32_154, %c0_i32_155] : memref<2x8x768xf32, #tpu.memory_space<vmem>> -> memref<1x8x768xf32, #tpu.memory_space<vmem>>
      %168 = tpu.memref_squeeze %167 : memref<1x8x768xf32, #tpu.memory_space<vmem>> -> memref<8x768xf32, #tpu.memory_space<vmem>>
      %169 = tpu.memref_slice %arg10[%162] : memref<2x!tpu.dma_semaphore, #tpu.memory_space<semaphore_mem>> -> memref<1x!tpu.dma_semaphore, #tpu.memory_space<semaphore_mem>>
      %170 = tpu.memref_squeeze %169 : memref<1x!tpu.dma_semaphore, #tpu.memory_space<semaphore_mem>> -> memref<!tpu.dma_semaphore, #tpu.memory_space<semaphore_mem>>
      tpu.enqueue_dma source(%166 : memref<8x768xf32, #tpu.memory_space<any>>) target(%168 : memref<8x768xf32, #tpu.memory_space<vmem>>) target_semaphore(%170 : memref<!tpu.dma_semaphore, #tpu.memory_space<semaphore_mem>>)
    } else {
    }
    %c0_i32_11 = arith.constant 0 : i32
    %c0_i32_12 = arith.constant 0 : i32
    %25 = tpu.memref_slice %arg8[%9, %c0_i32_11, %c0_i32_12] : memref<2x8x768xf32, #tpu.memory_space<vmem>> -> memref<1x8x768xf32, #tpu.memory_space<vmem>>
    %26 = tpu.memref_squeeze %25 : memref<1x8x768xf32, #tpu.memory_space<vmem>> -> memref<8x768xf32, #tpu.memory_space<vmem>>
    %c0 = arith.constant 0 : index
    %c0_13 = arith.constant 0 : index
    %27 = vector.load %26[%c0, %c0_13] : memref<8x768xf32, #tpu.memory_space<vmem>>, vector<8x512xf32>
    %c0_14 = arith.constant 0 : index
    %c0_15 = arith.constant 0 : index
    %28 = vector.load %arg9[%c0_14, %c0_15] : memref<216x512xf32, #tpu.memory_space<vmem>>, vector<8x512xf32>
    tpu.vector_store %arg9[%c0_14, %c0_15], %27 {strides = array<i32>} : memref<216x512xf32, #tpu.memory_space<vmem>>, vector<8x512xf32>,
    %c0_i32_16 = arith.constant 0 : i32
    %c0_i32_17 = arith.constant 0 : i32
    %29 = tpu.memref_slice %arg8[%9, %c0_i32_16, %c0_i32_17] : memref<2x8x768xf32, #tpu.memory_space<vmem>> -> memref<1x8x768xf32, #tpu.memory_space<vmem>>
    %30 = tpu.memref_squeeze %29 : memref<1x8x768xf32, #tpu.memory_space<vmem>> -> memref<8x768xf32, #tpu.memory_space<vmem>>
    %c0_18 = arith.constant 0 : index
    %c1 = arith.constant 1 : index
    %31 = vector.load %30[%c0_18, %c1] : memref<8x768xf32, #tpu.memory_space<vmem>>, vector<8x512xf32>
    %c8 = arith.constant 8 : index
    %c0_19 = arith.constant 0 : index
    %32 = vector.load %arg9[%c8, %c0_19] : memref<216x512xf32, #tpu.memory_space<vmem>>, vector<8x512xf32>
    tpu.vector_store %arg9[%c8, %c0_19], %31 {strides = array<i32>} : memref<216x512xf32, #tpu.memory_space<vmem>>, vector<8x512xf32>,
    %c0_i32_20 = arith.constant 0 : i32
    %c0_i32_21 = arith.constant 0 : i32
    %33 = tpu.memref_slice %arg8[%9, %c0_i32_20, %c0_i32_21] : memref<2x8x768xf32, #tpu.memory_space<vmem>> -> memref<1x8x768xf32, #tpu.memory_space<vmem>>
    %34 = tpu.memref_squeeze %33 : memref<1x8x768xf32, #tpu.memory_space<vmem>> -> memref<8x768xf32, #tpu.memory_space<vmem>>
    %c0_22 = arith.constant 0 : index
    %c2 = arith.constant 2 : index
    %35 = vector.load %34[%c0_22, %c2] : memref<8x768xf32, #tpu.memory_space<vmem>>, vector<8x512xf32>
    %c16 = arith.constant 16 : index
    %c0_23 = arith.constant 0 : index
    %36 = vector.load %arg9[%c16, %c0_23] : memref<216x512xf32, #tpu.memory_space<vmem>>, vector<8x512xf32>
    tpu.vector_store %arg9[%c16, %c0_23], %35 {strides = array<i32>} : memref<216x512xf32, #tpu.memory_space<vmem>>, vector<8x512xf32>,
    %c0_i32_24 = arith.constant 0 : i32
    %c0_i32_25 = arith.constant 0 : i32
    %37 = tpu.memref_slice %arg8[%9, %c0_i32_24, %c0_i32_25] : memref<2x8x768xf32, #tpu.memory_space<vmem>> -> memref<1x8x768xf32, #tpu.memory_space<vmem>>
    %38 = tpu.memref_squeeze %37 : memref<1x8x768xf32, #tpu.memory_space<vmem>> -> memref<8x768xf32, #tpu.memory_space<vmem>>
    %c0_26 = arith.constant 0 : index
    %c10 = arith.constant 10 : index
    %39 = vector.load %38[%c0_26, %c10] : memref<8x768xf32, #tpu.memory_space<vmem>>, vector<8x512xf32>
    %c24 = arith.constant 24 : index
    %c0_27 = arith.constant 0 : index
    %40 = vector.load %arg9[%c24, %c0_27] : memref<216x512xf32, #tpu.memory_space<vmem>>, vector<8x512xf32>
    tpu.vector_store %arg9[%c24, %c0_27], %39 {strides = array<i32>} : memref<216x512xf32, #tpu.memory_space<vmem>>, vector<8x512xf32>,
    %c0_i32_28 = arith.constant 0 : i32
    %c0_i32_29 = arith.constant 0 : i32
    %41 = tpu.memref_slice %arg8[%9, %c0_i32_28, %c0_i32_29] : memref<2x8x768xf32, #tpu.memory_space<vmem>> -> memref<1x8x768xf32, #tpu.memory_space<vmem>>
    %42 = tpu.memref_squeeze %41 : memref<1x8x768xf32, #tpu.memory_space<vmem>> -> memref<8x768xf32, #tpu.memory_space<vmem>>
    %c0_30 = arith.constant 0 : index
    %c11 = arith.constant 11 : index
    %43 = vector.load %42[%c0_30, %c11] : memref<8x768xf32, #tpu.memory_space<vmem>>, vector<8x512xf32>
    %c32 = arith.constant 32 : index
    %c0_31 = arith.constant 0 : index
    %44 = vector.load %arg9[%c32, %c0_31] : memref<216x512xf32, #tpu.memory_space<vmem>>, vector<8x512xf32>
    tpu.vector_store %arg9[%c32, %c0_31], %43 {strides = array<i32>} : memref<216x512xf32, #tpu.memory_space<vmem>>, vector<8x512xf32>,
    %c0_i32_32 = arith.constant 0 : i32
    %c0_i32_33 = arith.constant 0 : i32
    %45 = tpu.memref_slice %arg8[%9, %c0_i32_32, %c0_i32_33] : memref<2x8x768xf32, #tpu.memory_space<vmem>> -> memref<1x8x768xf32, #tpu.memory_space<vmem>>
    %46 = tpu.memref_squeeze %45 : memref<1x8x768xf32, #tpu.memory_space<vmem>> -> memref<8x768xf32, #tpu.memory_space<vmem>>
    %c0_34 = arith.constant 0 : index
    %c12 = arith.constant 12 : index
    %47 = vector.load %46[%c0_34, %c12] : memref<8x768xf32, #tpu.memory_space<vmem>>, vector<8x512xf32>
    %c40 = arith.constant 40 : index
    %c0_35 = arith.constant 0 : index
    %48 = vector.load %arg9[%c40, %c0_35] : memref<216x512xf32, #tpu.memory_space<vmem>>, vector<8x512xf32>
    tpu.vector_store %arg9[%c40, %c0_35], %47 {strides = array<i32>} : memref<216x512xf32, #tpu.memory_space<vmem>>, vector<8x512xf32>,
    %c0_i32_36 = arith.constant 0 : i32
    %c0_i32_37 = arith.constant 0 : i32
    %49 = tpu.memref_slice %arg8[%9, %c0_i32_36, %c0_i32_37] : memref<2x8x768xf32, #tpu.memory_space<vmem>> -> memref<1x8x768xf32, #tpu.memory_space<vmem>>
    %50 = tpu.memref_squeeze %49 : memref<1x8x768xf32, #tpu.memory_space<vmem>> -> memref<8x768xf32, #tpu.memory_space<vmem>>
    %c0_38 = arith.constant 0 : index
    %c20 = arith.constant 20 : index
    %51 = vector.load %50[%c0_38, %c20] : memref<8x768xf32, #tpu.memory_space<vmem>>, vector<8x512xf32>
    %c48 = arith.constant 48 : index
    %c0_39 = arith.constant 0 : index
    %52 = vector.load %arg9[%c48, %c0_39] : memref<216x512xf32, #tpu.memory_space<vmem>>, vector<8x512xf32>
    tpu.vector_store %arg9[%c48, %c0_39], %51 {strides = array<i32>} : memref<216x512xf32, #tpu.memory_space<vmem>>, vector<8x512xf32>,
    %c0_i32_40 = arith.constant 0 : i32
    %c0_i32_41 = arith.constant 0 : i32
    %53 = tpu.memref_slice %arg8[%9, %c0_i32_40, %c0_i32_41] : memref<2x8x768xf32, #tpu.memory_space<vmem>> -> memref<1x8x768xf32, #tpu.memory_space<vmem>>
    %54 = tpu.memref_squeeze %53 : memref<1x8x768xf32, #tpu.memory_space<vmem>> -> memref<8x768xf32, #tpu.memory_space<vmem>>
    %c0_42 = arith.constant 0 : index
    %c21 = arith.constant 21 : index
    %55 = vector.load %54[%c0_42, %c21] : memref<8x768xf32, #tpu.memory_space<vmem>>, vector<8x512xf32>
    %c56 = arith.constant 56 : index
    %c0_43 = arith.constant 0 : index
    %56 = vector.load %arg9[%c56, %c0_43] : memref<216x512xf32, #tpu.memory_space<vmem>>, vector<8x512xf32>
    tpu.vector_store %arg9[%c56, %c0_43], %55 {strides = array<i32>} : memref<216x512xf32, #tpu.memory_space<vmem>>, vector<8x512xf32>,
    %c0_i32_44 = arith.constant 0 : i32
    %c0_i32_45 = arith.constant 0 : i32
    %57 = tpu.memref_slice %arg8[%9, %c0_i32_44, %c0_i32_45] : memref<2x8x768xf32, #tpu.memory_space<vmem>> -> memref<1x8x768xf32, #tpu.memory_space<vmem>>
    %58 = tpu.memref_squeeze %57 : memref<1x8x768xf32, #tpu.memory_space<vmem>> -> memref<8x768xf32, #tpu.memory_space<vmem>>
    %c0_46 = arith.constant 0 : index
    %c22 = arith.constant 22 : index
    %59 = vector.load %58[%c0_46, %c22] : memref<8x768xf32, #tpu.memory_space<vmem>>, vector<8x512xf32>
    %c64 = arith.constant 64 : index
    %c0_47 = arith.constant 0 : index
    %60 = vector.load %arg9[%c64, %c0_47] : memref<216x512xf32, #tpu.memory_space<vmem>>, vector<8x512xf32>
    tpu.vector_store %arg9[%c64, %c0_47], %59 {strides = array<i32>} : memref<216x512xf32, #tpu.memory_space<vmem>>, vector<8x512xf32>,
    %c0_i32_48 = arith.constant 0 : i32
    %c0_i32_49 = arith.constant 0 : i32
    %61 = tpu.memref_slice %arg8[%9, %c0_i32_48, %c0_i32_49] : memref<2x8x768xf32, #tpu.memory_space<vmem>> -> memref<1x8x768xf32, #tpu.memory_space<vmem>>
    %62 = tpu.memref_squeeze %61 : memref<1x8x768xf32, #tpu.memory_space<vmem>> -> memref<8x768xf32, #tpu.memory_space<vmem>>
    %c0_50 = arith.constant 0 : index
    %c100 = arith.constant 100 : index
    %63 = vector.load %62[%c0_50, %c100] : memref<8x768xf32, #tpu.memory_space<vmem>>, vector<8x512xf32>
    %c72 = arith.constant 72 : index
    %c0_51 = arith.constant 0 : index
    %64 = vector.load %arg9[%c72, %c0_51] : memref<216x512xf32, #tpu.memory_space<vmem>>, vector<8x512xf32>
    tpu.vector_store %arg9[%c72, %c0_51], %63 {strides = array<i32>} : memref<216x512xf32, #tpu.memory_space<vmem>>, vector<8x512xf32>,
    %c0_i32_52 = arith.constant 0 : i32
    %c0_i32_53 = arith.constant 0 : i32
    %65 = tpu.memref_slice %arg8[%9, %c0_i32_52, %c0_i32_53] : memref<2x8x768xf32, #tpu.memory_space<vmem>> -> memref<1x8x768xf32, #tpu.memory_space<vmem>>
    %66 = tpu.memref_squeeze %65 : memref<1x8x768xf32, #tpu.memory_space<vmem>> -> memref<8x768xf32, #tpu.memory_space<vmem>>
    %c0_54 = arith.constant 0 : index
    %c101 = arith.constant 101 : index
    %67 = vector.load %66[%c0_54, %c101] : memref<8x768xf32, #tpu.memory_space<vmem>>, vector<8x512xf32>
    %c80 = arith.constant 80 : index
    %c0_55 = arith.constant 0 : index
    %68 = vector.load %arg9[%c80, %c0_55] : memref<216x512xf32, #tpu.memory_space<vmem>>, vector<8x512xf32>
    tpu.vector_store %arg9[%c80, %c0_55], %67 {strides = array<i32>} : memref<216x512xf32, #tpu.memory_space<vmem>>, vector<8x512xf32>,
    %c0_i32_56 = arith.constant 0 : i32
    %c0_i32_57 = arith.constant 0 : i32
    %69 = tpu.memref_slice %arg8[%9, %c0_i32_56, %c0_i32_57] : memref<2x8x768xf32, #tpu.memory_space<vmem>> -> memref<1x8x768xf32, #tpu.memory_space<vmem>>
    %70 = tpu.memref_squeeze %69 : memref<1x8x768xf32, #tpu.memory_space<vmem>> -> memref<8x768xf32, #tpu.memory_space<vmem>>
    %c0_58 = arith.constant 0 : index
    %c102 = arith.constant 102 : index
    %71 = vector.load %70[%c0_58, %c102] : memref<8x768xf32, #tpu.memory_space<vmem>>, vector<8x512xf32>
    %c88 = arith.constant 88 : index
    %c0_59 = arith.constant 0 : index
    %72 = vector.load %arg9[%c88, %c0_59] : memref<216x512xf32, #tpu.memory_space<vmem>>, vector<8x512xf32>
    tpu.vector_store %arg9[%c88, %c0_59], %71 {strides = array<i32>} : memref<216x512xf32, #tpu.memory_space<vmem>>, vector<8x512xf32>,
    %c0_i32_60 = arith.constant 0 : i32
    %c0_i32_61 = arith.constant 0 : i32
    %73 = tpu.memref_slice %arg8[%9, %c0_i32_60, %c0_i32_61] : memref<2x8x768xf32, #tpu.memory_space<vmem>> -> memref<1x8x768xf32, #tpu.memory_space<vmem>>
    %74 = tpu.memref_squeeze %73 : memref<1x8x768xf32, #tpu.memory_space<vmem>> -> memref<8x768xf32, #tpu.memory_space<vmem>>
    %c0_62 = arith.constant 0 : index
    %c110 = arith.constant 110 : index
    %75 = vector.load %74[%c0_62, %c110] : memref<8x768xf32, #tpu.memory_space<vmem>>, vector<8x512xf32>
    %c96 = arith.constant 96 : index
    %c0_63 = arith.constant 0 : index
    %76 = vector.load %arg9[%c96, %c0_63] : memref<216x512xf32, #tpu.memory_space<vmem>>, vector<8x512xf32>
    tpu.vector_store %arg9[%c96, %c0_63], %75 {strides = array<i32>} : memref<216x512xf32, #tpu.memory_space<vmem>>, vector<8x512xf32>,
    %c0_i32_64 = arith.constant 0 : i32
    %c0_i32_65 = arith.constant 0 : i32
    %77 = tpu.memref_slice %arg8[%9, %c0_i32_64, %c0_i32_65] : memref<2x8x768xf32, #tpu.memory_space<vmem>> -> memref<1x8x768xf32, #tpu.memory_space<vmem>>
    %78 = tpu.memref_squeeze %77 : memref<1x8x768xf32, #tpu.memory_space<vmem>> -> memref<8x768xf32, #tpu.memory_space<vmem>>
    %c0_66 = arith.constant 0 : index
    %c111 = arith.constant 111 : index
    %79 = vector.load %78[%c0_66, %c111] : memref<8x768xf32, #tpu.memory_space<vmem>>, vector<8x512xf32>
    %c104 = arith.constant 104 : index
    %c0_67 = arith.constant 0 : index
    %80 = vector.load %arg9[%c104, %c0_67] : memref<216x512xf32, #tpu.memory_space<vmem>>, vector<8x512xf32>
    tpu.vector_store %arg9[%c104, %c0_67], %79 {strides = array<i32>} : memref<216x512xf32, #tpu.memory_space<vmem>>, vector<8x512xf32>,
    %c0_i32_68 = arith.constant 0 : i32
    %c0_i32_69 = arith.constant 0 : i32
    %81 = tpu.memref_slice %arg8[%9, %c0_i32_68, %c0_i32_69] : memref<2x8x768xf32, #tpu.memory_space<vmem>> -> memref<1x8x768xf32, #tpu.memory_space<vmem>>
    %82 = tpu.memref_squeeze %81 : memref<1x8x768xf32, #tpu.memory_space<vmem>> -> memref<8x768xf32, #tpu.memory_space<vmem>>
    %c0_70 = arith.constant 0 : index
    %c112 = arith.constant 112 : index
    %83 = vector.load %82[%c0_70, %c112] : memref<8x768xf32, #tpu.memory_space<vmem>>, vector<8x512xf32>
    %c112_71 = arith.constant 112 : index
    %c0_72 = arith.constant 0 : index
    %84 = vector.load %arg9[%c112_71, %c0_72] : memref<216x512xf32, #tpu.memory_space<vmem>>, vector<8x512xf32>
    tpu.vector_store %arg9[%c112_71, %c0_72], %83 {strides = array<i32>} : memref<216x512xf32, #tpu.memory_space<vmem>>, vector<8x512xf32>,
    %c0_i32_73 = arith.constant 0 : i32
    %c0_i32_74 = arith.constant 0 : i32
    %85 = tpu.memref_slice %arg8[%9, %c0_i32_73, %c0_i32_74] : memref<2x8x768xf32, #tpu.memory_space<vmem>> -> memref<1x8x768xf32, #tpu.memory_space<vmem>>
    %86 = tpu.memref_squeeze %85 : memref<1x8x768xf32, #tpu.memory_space<vmem>> -> memref<8x768xf32, #tpu.memory_space<vmem>>
    %c0_75 = arith.constant 0 : index
    %c120 = arith.constant 120 : index
    %87 = vector.load %86[%c0_75, %c120] : memref<8x768xf32, #tpu.memory_space<vmem>>, vector<8x512xf32>
    %c120_76 = arith.constant 120 : index
    %c0_77 = arith.constant 0 : index
    %88 = vector.load %arg9[%c120_76, %c0_77] : memref<216x512xf32, #tpu.memory_space<vmem>>, vector<8x512xf32>
    tpu.vector_store %arg9[%c120_76, %c0_77], %87 {strides = array<i32>} : memref<216x512xf32, #tpu.memory_space<vmem>>, vector<8x512xf32>,
    %c0_i32_78 = arith.constant 0 : i32
    %c0_i32_79 = arith.constant 0 : i32
    %89 = tpu.memref_slice %arg8[%9, %c0_i32_78, %c0_i32_79] : memref<2x8x768xf32, #tpu.memory_space<vmem>> -> memref<1x8x768xf32, #tpu.memory_space<vmem>>
    %90 = tpu.memref_squeeze %89 : memref<1x8x768xf32, #tpu.memory_space<vmem>> -> memref<8x768xf32, #tpu.memory_space<vmem>>
    %c0_80 = arith.constant 0 : index
    %c121 = arith.constant 121 : index
    %91 = vector.load %90[%c0_80, %c121] : memref<8x768xf32, #tpu.memory_space<vmem>>, vector<8x512xf32>
    %c128 = arith.constant 128 : index
    %c0_81 = arith.constant 0 : index
    %92 = vector.load %arg9[%c128, %c0_81] : memref<216x512xf32, #tpu.memory_space<vmem>>, vector<8x512xf32>
    tpu.vector_store %arg9[%c128, %c0_81], %91 {strides = array<i32>} : memref<216x512xf32, #tpu.memory_space<vmem>>, vector<8x512xf32>,
    %c0_i32_82 = arith.constant 0 : i32
    %c0_i32_83 = arith.constant 0 : i32
    %93 = tpu.memref_slice %arg8[%9, %c0_i32_82, %c0_i32_83] : memref<2x8x768xf32, #tpu.memory_space<vmem>> -> memref<1x8x768xf32, #tpu.memory_space<vmem>>
    %94 = tpu.memref_squeeze %93 : memref<1x8x768xf32, #tpu.memory_space<vmem>> -> memref<8x768xf32, #tpu.memory_space<vmem>>
    %c0_84 = arith.constant 0 : index
    %c122 = arith.constant 122 : index
    %95 = vector.load %94[%c0_84, %c122] : memref<8x768xf32, #tpu.memory_space<vmem>>, vector<8x512xf32>
    %c136 = arith.constant 136 : index
    %c0_85 = arith.constant 0 : index
    %96 = vector.load %arg9[%c136, %c0_85] : memref<216x512xf32, #tpu.memory_space<vmem>>, vector<8x512xf32>
    tpu.vector_store %arg9[%c136, %c0_85], %95 {strides = array<i32>} : memref<216x512xf32, #tpu.memory_space<vmem>>, vector<8x512xf32>,
    %c0_i32_86 = arith.constant 0 : i32
    %c0_i32_87 = arith.constant 0 : i32
    %97 = tpu.memref_slice %arg8[%9, %c0_i32_86, %c0_i32_87] : memref<2x8x768xf32, #tpu.memory_space<vmem>> -> memref<1x8x768xf32, #tpu.memory_space<vmem>>
    %98 = tpu.memref_squeeze %97 : memref<1x8x768xf32, #tpu.memory_space<vmem>> -> memref<8x768xf32, #tpu.memory_space<vmem>>
    %c0_88 = arith.constant 0 : index
    %c200 = arith.constant 200 : index
    %99 = vector.load %98[%c0_88, %c200] : memref<8x768xf32, #tpu.memory_space<vmem>>, vector<8x512xf32>
    %c144 = arith.constant 144 : index
    %c0_89 = arith.constant 0 : index
    %100 = vector.load %arg9[%c144, %c0_89] : memref<216x512xf32, #tpu.memory_space<vmem>>, vector<8x512xf32>
    tpu.vector_store %arg9[%c144, %c0_89], %99 {strides = array<i32>} : memref<216x512xf32, #tpu.memory_space<vmem>>, vector<8x512xf32>,
    %c0_i32_90 = arith.constant 0 : i32
    %c0_i32_91 = arith.constant 0 : i32
    %101 = tpu.memref_slice %arg8[%9, %c0_i32_90, %c0_i32_91] : memref<2x8x768xf32, #tpu.memory_space<vmem>> -> memref<1x8x768xf32, #tpu.memory_space<vmem>>
    %102 = tpu.memref_squeeze %101 : memref<1x8x768xf32, #tpu.memory_space<vmem>> -> memref<8x768xf32, #tpu.memory_space<vmem>>
    %c0_92 = arith.constant 0 : index
    %c201 = arith.constant 201 : index
    %103 = vector.load %102[%c0_92, %c201] : memref<8x768xf32, #tpu.memory_space<vmem>>, vector<8x512xf32>
    %c152 = arith.constant 152 : index
    %c0_93 = arith.constant 0 : index
    %104 = vector.load %arg9[%c152, %c0_93] : memref<216x512xf32, #tpu.memory_space<vmem>>, vector<8x512xf32>
    tpu.vector_store %arg9[%c152, %c0_93], %103 {strides = array<i32>} : memref<216x512xf32, #tpu.memory_space<vmem>>, vector<8x512xf32>,
    %c0_i32_94 = arith.constant 0 : i32
    %c0_i32_95 = arith.constant 0 : i32
    %105 = tpu.memref_slice %arg8[%9, %c0_i32_94, %c0_i32_95] : memref<2x8x768xf32, #tpu.memory_space<vmem>> -> memref<1x8x768xf32, #tpu.memory_space<vmem>>
    %106 = tpu.memref_squeeze %105 : memref<1x8x768xf32, #tpu.memory_space<vmem>> -> memref<8x768xf32, #tpu.memory_space<vmem>>
    %c0_96 = arith.constant 0 : index
    %c202 = arith.constant 202 : index
    %107 = vector.load %106[%c0_96, %c202] : memref<8x768xf32, #tpu.memory_space<vmem>>, vector<8x512xf32>
    %c160 = arith.constant 160 : index
    %c0_97 = arith.constant 0 : index
    %108 = vector.load %arg9[%c160, %c0_97] : memref<216x512xf32, #tpu.memory_space<vmem>>, vector<8x512xf32>
    tpu.vector_store %arg9[%c160, %c0_97], %107 {strides = array<i32>} : memref<216x512xf32, #tpu.memory_space<vmem>>, vector<8x512xf32>,
    %c0_i32_98 = arith.constant 0 : i32
    %c0_i32_99 = arith.constant 0 : i32
    %109 = tpu.memref_slice %arg8[%9, %c0_i32_98, %c0_i32_99] : memref<2x8x768xf32, #tpu.memory_space<vmem>> -> memref<1x8x768xf32, #tpu.memory_space<vmem>>
    %110 = tpu.memref_squeeze %109 : memref<1x8x768xf32, #tpu.memory_space<vmem>> -> memref<8x768xf32, #tpu.memory_space<vmem>>
    %c0_100 = arith.constant 0 : index
    %c210 = arith.constant 210 : index
    %111 = vector.load %110[%c0_100, %c210] : memref<8x768xf32, #tpu.memory_space<vmem>>, vector<8x512xf32>
    %c168 = arith.constant 168 : index
    %c0_101 = arith.constant 0 : index
    %112 = vector.load %arg9[%c168, %c0_101] : memref<216x512xf32, #tpu.memory_space<vmem>>, vector<8x512xf32>
    tpu.vector_store %arg9[%c168, %c0_101], %111 {strides = array<i32>} : memref<216x512xf32, #tpu.memory_space<vmem>>, vector<8x512xf32>,
    %c0_i32_102 = arith.constant 0 : i32
    %c0_i32_103 = arith.constant 0 : i32
    %113 = tpu.memref_slice %arg8[%9, %c0_i32_102, %c0_i32_103] : memref<2x8x768xf32, #tpu.memory_space<vmem>> -> memref<1x8x768xf32, #tpu.memory_space<vmem>>
    %114 = tpu.memref_squeeze %113 : memref<1x8x768xf32, #tpu.memory_space<vmem>> -> memref<8x768xf32, #tpu.memory_space<vmem>>
    %c0_104 = arith.constant 0 : index
    %c211 = arith.constant 211 : index
    %115 = vector.load %114[%c0_104, %c211] : memref<8x768xf32, #tpu.memory_space<vmem>>, vector<8x512xf32>
    %c176 = arith.constant 176 : index
    %c0_105 = arith.constant 0 : index
    %116 = vector.load %arg9[%c176, %c0_105] : memref<216x512xf32, #tpu.memory_space<vmem>>, vector<8x512xf32>
    tpu.vector_store %arg9[%c176, %c0_105], %115 {strides = array<i32>} : memref<216x512xf32, #tpu.memory_space<vmem>>, vector<8x512xf32>,
    %c0_i32_106 = arith.constant 0 : i32
    %c0_i32_107 = arith.constant 0 : i32
    %117 = tpu.memref_slice %arg8[%9, %c0_i32_106, %c0_i32_107] : memref<2x8x768xf32, #tpu.memory_space<vmem>> -> memref<1x8x768xf32, #tpu.memory_space<vmem>>
    %118 = tpu.memref_squeeze %117 : memref<1x8x768xf32, #tpu.memory_space<vmem>> -> memref<8x768xf32, #tpu.memory_space<vmem>>
    %c0_108 = arith.constant 0 : index
    %c212 = arith.constant 212 : index
    %119 = vector.load %118[%c0_108, %c212] : memref<8x768xf32, #tpu.memory_space<vmem>>, vector<8x512xf32>
    %c184 = arith.constant 184 : index
    %c0_109 = arith.constant 0 : index
    %120 = vector.load %arg9[%c184, %c0_109] : memref<216x512xf32, #tpu.memory_space<vmem>>, vector<8x512xf32>
    tpu.vector_store %arg9[%c184, %c0_109], %119 {strides = array<i32>} : memref<216x512xf32, #tpu.memory_space<vmem>>, vector<8x512xf32>,
    %c0_i32_110 = arith.constant 0 : i32
    %c0_i32_111 = arith.constant 0 : i32
    %121 = tpu.memref_slice %arg8[%9, %c0_i32_110, %c0_i32_111] : memref<2x8x768xf32, #tpu.memory_space<vmem>> -> memref<1x8x768xf32, #tpu.memory_space<vmem>>
    %122 = tpu.memref_squeeze %121 : memref<1x8x768xf32, #tpu.memory_space<vmem>> -> memref<8x768xf32, #tpu.memory_space<vmem>>
    %c0_112 = arith.constant 0 : index
    %c220 = arith.constant 220 : index
    %123 = vector.load %122[%c0_112, %c220] : memref<8x768xf32, #tpu.memory_space<vmem>>, vector<8x512xf32>
    %c192 = arith.constant 192 : index
    %c0_113 = arith.constant 0 : index
    %124 = vector.load %arg9[%c192, %c0_113] : memref<216x512xf32, #tpu.memory_space<vmem>>, vector<8x512xf32>
    tpu.vector_store %arg9[%c192, %c0_113], %123 {strides = array<i32>} : memref<216x512xf32, #tpu.memory_space<vmem>>, vector<8x512xf32>,
    %c0_i32_114 = arith.constant 0 : i32
    %c0_i32_115 = arith.constant 0 : i32
    %125 = tpu.memref_slice %arg8[%9, %c0_i32_114, %c0_i32_115] : memref<2x8x768xf32, #tpu.memory_space<vmem>> -> memref<1x8x768xf32, #tpu.memory_space<vmem>>
    %126 = tpu.memref_squeeze %125 : memref<1x8x768xf32, #tpu.memory_space<vmem>> -> memref<8x768xf32, #tpu.memory_space<vmem>>
    %c0_116 = arith.constant 0 : index
    %c221 = arith.constant 221 : index
    %127 = vector.load %126[%c0_116, %c221] : memref<8x768xf32, #tpu.memory_space<vmem>>, vector<8x512xf32>
    %c200_117 = arith.constant 200 : index
    %c0_118 = arith.constant 0 : index
    %128 = vector.load %arg9[%c200_117, %c0_118] : memref<216x512xf32, #tpu.memory_space<vmem>>, vector<8x512xf32>
    tpu.vector_store %arg9[%c200_117, %c0_118], %127 {strides = array<i32>} : memref<216x512xf32, #tpu.memory_space<vmem>>, vector<8x512xf32>,
    %c0_i32_119 = arith.constant 0 : i32
    %c0_i32_120 = arith.constant 0 : i32
    %129 = tpu.memref_slice %arg8[%9, %c0_i32_119, %c0_i32_120] : memref<2x8x768xf32, #tpu.memory_space<vmem>> -> memref<1x8x768xf32, #tpu.memory_space<vmem>>
    %130 = tpu.memref_squeeze %129 : memref<1x8x768xf32, #tpu.memory_space<vmem>> -> memref<8x768xf32, #tpu.memory_space<vmem>>
    %c0_121 = arith.constant 0 : index
    %c222 = arith.constant 222 : index
    %131 = vector.load %130[%c0_121, %c222] : memref<8x768xf32, #tpu.memory_space<vmem>>, vector<8x512xf32>
    %c208 = arith.constant 208 : index
    %c0_122 = arith.constant 0 : index
    %132 = vector.load %arg9[%c208, %c0_122] : memref<216x512xf32, #tpu.memory_space<vmem>>, vector<8x512xf32>
    tpu.vector_store %arg9[%c208, %c0_122], %131 {strides = array<i32>} : memref<216x512xf32, #tpu.memory_space<vmem>>, vector<8x512xf32>,
    %c0_123 = arith.constant 0 : index
    %c0_124 = arith.constant 0 : index
    %133 = vector.load %arg3[%c0_123, %c0_124] : memref<8x216xf32, #tpu.memory_space<vmem>>, vector<8x216xf32>
    %c0_125 = arith.constant 0 : index
    %c0_126 = arith.constant 0 : index
    %134 = vector.load %arg9[%c0_125, %c0_126] : memref<216x512xf32, #tpu.memory_space<vmem>>, vector<216x512xf32>
    %cst = arith.constant dense<0.000000e+00> : vector<8x512xf32>
    %135 = tpu.matmul %133, %134, %cst {dimension_numbers = #tpu.dot_dimension_numbers<[1], [0], [0], [1], [0, 0, 1, 1], [], []>} : vector<8x216xf32>, vector<216x512xf32>, vector<8x512xf32> -> vector<8x512xf32>
    %c0_127 = arith.constant 0 : index
    %c0_128 = arith.constant 0 : index
    %c0_129 = arith.constant 0 : index
    %136 = vector.load %arg5[%c0_127, %c0_128, %c0_129] : memref<1x8x512xf32, #tpu.memory_space<vmem>>, vector<1x8x512xf32>
    %137 = vector.shape_cast %136 : vector<1x8x512xf32> to vector<8x512xf32>
    %138 = vector.shape_cast %135 : vector<8x512xf32> to vector<1x8x512xf32>
    tpu.vector_store %arg5[%c0_127, %c0_128, %c0_129], %138 {strides = array<i32>} : memref<1x8x512xf32, #tpu.memory_space<vmem>>, vector<1x8x512xf32>,
    %c0_i32_130 = arith.constant 0 : i32
    %139 = arith.cmpi eq, %arg1, %c0_i32_130 : i32
    %140 = arith.extui %139 : i1 to i32
    %c0_i32_131 = arith.constant 0 : i32
    %141 = arith.cmpi ne, %140, %c0_i32_131 : i32
    scf.if %141 {
      %cst_150 = arith.constant 0.000000e+00 : f32
      %161 = vector.broadcast %cst_150 : f32 to vector<1x8x1xf32>
      %c0_151 = arith.constant 0 : index
      %c0_152 = arith.constant 0 : index
      %c0_153 = arith.constant 0 : index
      %162 = vector.load %arg6[%c0_151, %c0_152, %c0_153] : memref<1x8x1xf32, #tpu.memory_space<vmem>>, vector<1x8x1xf32>
      tpu.vector_store %arg6[%c0_151, %c0_152, %c0_153], %161 {strides = array<i32>} : memref<1x8x1xf32, #tpu.memory_space<vmem>>, vector<1x8x1xf32>,
      %cst_154 = arith.constant 0.000000e+00 : f32
      %163 = vector.broadcast %cst_154 : f32 to vector<1x8x1xf32>
      %c0_155 = arith.constant 0 : index
      %c0_156 = arith.constant 0 : index
      %c0_157 = arith.constant 0 : index
      %164 = vector.load %arg7[%c0_155, %c0_156, %c0_157] : memref<1x8x1xf32, #tpu.memory_space<vmem>>, vector<1x8x1xf32>
      tpu.vector_store %arg7[%c0_155, %c0_156, %c0_157], %163 {strides = array<i32>} : memref<1x8x1xf32, #tpu.memory_space<vmem>>, vector<1x8x1xf32>,
    } else {
    }
    %c0_132 = arith.constant 0 : index
    %c0_133 = arith.constant 0 : index
    %142 = vector.load %arg4[%c0_132, %c0_133] : memref<1x512xf32, #tpu.memory_space<vmem>>, vector<1x512xf32>
    %143 = vector.broadcast %142 : vector<1x512xf32> to vector<8x512xf32>
    %144 = arith.mulf %135, %143 : vector<8x512xf32>
    %c0_134 = arith.constant 0 : index
    %c0_135 = arith.constant 0 : index
    %c0_136 = arith.constant 0 : index
    %145 = vector.load %arg6[%c0_134, %c0_135, %c0_136] : memref<1x8x1xf32, #tpu.memory_space<vmem>>, vector<1x8x1xf32>
    %cst_137 = arith.constant dense<0.000000e+00> : vector<8xf32>
    %146 = vector.multi_reduction <add>, %144, %cst_137 [1] : vector<8x512xf32> to vector<8xf32>
    %147 = vector.shape_cast %146 : vector<8xf32> to vector<8x1xf32>
    %148 = vector.shape_cast %147 : vector<8x1xf32> to vector<1x8x1xf32>
    %149 = arith.addf %145, %148 : vector<1x8x1xf32>
    %c0_138 = arith.constant 0 : index
    %c0_139 = arith.constant 0 : index
    %c0_140 = arith.constant 0 : index
    %150 = vector.load %arg6[%c0_138, %c0_139, %c0_140] : memref<1x8x1xf32, #tpu.memory_space<vmem>>, vector<1x8x1xf32>
    tpu.vector_store %arg6[%c0_138, %c0_139, %c0_140], %149 {strides = array<i32>} : memref<1x8x1xf32, #tpu.memory_space<vmem>>, vector<1x8x1xf32>,
    %c0_141 = arith.constant 0 : index
    %c0_142 = arith.constant 0 : index
    %c0_143 = arith.constant 0 : index
    %151 = vector.load %arg7[%c0_141, %c0_142, %c0_143] : memref<1x8x1xf32, #tpu.memory_space<vmem>>, vector<1x8x1xf32>
    %152 = arith.mulf %144, %135 : vector<8x512xf32>
    %cst_144 = arith.constant dense<0.000000e+00> : vector<8xf32>
    %153 = vector.multi_reduction <add>, %152, %cst_144 [1] : vector<8x512xf32> to vector<8xf32>
    %154 = vector.shape_cast %153 : vector<8xf32> to vector<8x1xf32>
    %155 = vector.shape_cast %154 : vector<8x1xf32> to vector<1x8x1xf32>
    %156 = arith.addf %151, %155 : vector<1x8x1xf32>
    %c0_145 = arith.constant 0 : index
    %c0_146 = arith.constant 0 : index
    %c0_147 = arith.constant 0 : index
    %157 = vector.load %arg7[%c0_145, %c0_146, %c0_147] : memref<1x8x1xf32, #tpu.memory_space<vmem>>, vector<1x8x1xf32>
    tpu.vector_store %arg7[%c0_145, %c0_146, %c0_147], %156 {strides = array<i32>} : memref<1x8x1xf32, #tpu.memory_space<vmem>>, vector<1x8x1xf32>,
    %c1_i32_148 = arith.constant 1 : i32
    %158 = arith.cmpi eq, %arg1, %c1_i32_148 : i32
    %159 = arith.extui %158 : i1 to i32
    %c0_i32_149 = arith.constant 0 : i32
    %160 = arith.cmpi ne, %159, %c0_i32_149 : i32
    scf.if %160 {
      %c0_150 = arith.constant 0 : index
      %c0_151 = arith.constant 0 : index
      %c0_152 = arith.constant 0 : index
      %161 = vector.load %arg6[%c0_150, %c0_151, %c0_152] : memref<1x8x1xf32, #tpu.memory_space<vmem>>, vector<1x8x1xf32>
      %cst_153 = arith.constant 0.001953125 : f32
      %162 = vector.broadcast %cst_153 : f32 to vector<1x8x1xf32>
      %163 = arith.mulf %161, %162 : vector<1x8x1xf32>
      %c0_154 = arith.constant 0 : index
      %c0_155 = arith.constant 0 : index
      %c0_156 = arith.constant 0 : index
      %164 = vector.load %arg7[%c0_154, %c0_155, %c0_156] : memref<1x8x1xf32, #tpu.memory_space<vmem>>, vector<1x8x1xf32>
      %cst_157 = arith.constant 0.001953125 : f32
      %165 = vector.broadcast %cst_157 : f32 to vector<1x8x1xf32>
      %166 = arith.mulf %164, %165 : vector<1x8x1xf32>
      %167 = arith.mulf %163, %163 : vector<1x8x1xf32>
      %168 = arith.subf %166, %167 : vector<1x8x1xf32>
      %cst_158 = arith.constant 9.99999974E-6 : f32
      %169 = vector.broadcast %cst_158 : f32 to vector<1x8x1xf32>
      %170 = arith.addf %168, %169 : vector<1x8x1xf32>
      %171 = math.rsqrt %170 : vector<1x8x1xf32>
      %c0_159 = arith.constant 0 : index
      %c0_160 = arith.constant 0 : index
      %c0_161 = arith.constant 0 : index
      %172 = vector.load %arg7[%c0_159, %c0_160, %c0_161] : memref<1x8x1xf32, #tpu.memory_space<vmem>>, vector<1x8x1xf32>
      tpu.vector_store %arg7[%c0_159, %c0_160, %c0_161], %171 {strides = array<i32>} : memref<1x8x1xf32, #tpu.memory_space<vmem>>, vector<1x8x1xf32>,
      %cst_162 = arith.constant 0.000000e+00 : f32
      %173 = vector.broadcast %cst_162 : f32 to vector<1x8x1xf32>
      %174 = arith.subf %173, %163 : vector<1x8x1xf32>
      %175 = arith.mulf %174, %171 : vector<1x8x1xf32>
      %c0_163 = arith.constant 0 : index
      %c0_164 = arith.constant 0 : index
      %c0_165 = arith.constant 0 : index
      %176 = vector.load %arg6[%c0_163, %c0_164, %c0_165] : memref<1x8x1xf32, #tpu.memory_space<vmem>>, vector<1x8x1xf32>
      tpu.vector_store %arg6[%c0_163, %c0_164, %c0_165], %175 {strides = array<i32>} : memref<1x8x1xf32, #tpu.memory_space<vmem>>, vector<1x8x1xf32>,
    } else {
    }
    return
  }
  func.func @transform_1(%arg0: i32, %arg1: i32) -> (i32, i32) {
    %c0_i32 = arith.constant 0 : i32
    %c0_i32_0 = arith.constant 0 : i32
    %c0_i32_1 = arith.constant 0 : i32
    return %c0_i32, %c0_i32_0 : i32, i32
  }
  func.func @transform_2(%arg0: i32, %arg1: i32) -> (i32, i32) {
    %c0_i32 = arith.constant 0 : i32
    %c0_i32_0 = arith.constant 0 : i32
    return %c0_i32, %arg1 : i32, i32
  }
  func.func @transform_3(%arg0: i32, %arg1: i32) -> (i32, i32, i32) {
    %c0_i32 = arith.constant 0 : i32
    %c0_i32_0 = arith.constant 0 : i32
    return %arg0, %c0_i32, %arg1 : i32, i32, i32
  }
  func.func @transform_4(%arg0: i32, %arg1: i32) -> (i32, i32, i32) {
    %c0_i32 = arith.constant 0 : i32
    %c0_i32_0 = arith.constant 0 : i32
    %c0_i32_1 = arith.constant 0 : i32
    return %arg0, %c0_i32, %c0_i32_0 : i32, i32, i32
  }
  func.func @transform_5(%arg0: i32, %arg1: i32) -> (i32, i32, i32) {
    %c0_i32 = arith.constant 0 : i32
    %c0_i32_0 = arith.constant 0 : i32
    %c0_i32_1 = arith.constant 0 : i32
    return %arg0, %c0_i32, %c0_i32_0 : i32, i32, i32
  }
}

</mosaic_0001>

<bundles_post_ra>
// kernel: tpu_custom_call.1
= control target key start
LH: loop header
LB: loop body
LE: loop exit
PB: predicated region body
PF: predicated region fallthrough
CT: control target
= control target key end

     0   :  { %s2740_s0 = inlined_call_operand.hbm [shape: f32[2,8,1280], index: 0, kind: input, shape index: {}]   ;;  %s2741_s1 = inlined_call_operand.hbm [shape: f32[8,216], index: 1, kind: input, shape index: {}]   ;;  %s2742_s2 = inlined_call_operand.hbm [shape: f32[1,1024], index: 2, kind: input, shape index: {}]   ;;  %s2743_s3 = inlined_call_operand.hbm [shape: f32[2,8,1024], index: 3, kind: output, shape index: {0}]   ;;  %s2744_s4 = inlined_call_operand.vmem [shape: f32[2,8,1], index: 4, kind: output, shape index: {1}]   ;;  %s2745_s5 = inlined_call_operand.vmem [shape: f32[2,8,1], index: 5, kind: output, shape index: {2}]  }
   0x1   :  { %2762 = sst [smem:[#allocation31_spill]] %s2740_s0 }
   0x2   :  { %2763 = sst [smem:[#allocation32_spill]] %s2741_s1 }
   0x3   :  { %2764 = sst [smem:[#allocation33_spill]] %s2742_s2 }
   0x4   :  { %2765 = sst [smem:[#allocation34_spill]] %s2743_s3 }
   0x5   :  { %2766 = sst [smem:[#allocation35_spill]] %s2744_s4 }
   0x6   :  { %2767 = sst [smem:[#allocation36_spill]] %s2745_s5 }
   0x7   :  { %11 = vsyncpa [#allocation6], 0 }
   0x8   :  { %12 = vsyncpa [#allocation9], 0 }
   0x9   :  { %14 = vsyncpa [#allocation9 + $0x1], 0 }
   0xa   :  { %15 = vsyncpa [#allocation7], 0 }
   0xb   :  { %17 = vsyncpa [#allocation7 + $0x1], 0  ;;  %s2215_s18 = smov 0   ;;  %s2217_s19 = smov 0  }
   0xc   :  { %s2219_s20 = smov 0   ;;  %s2221_s21 = smov 0  }
   0xd   :  { %s2223_s22 = smov 0   ;;  %s2225_s23 = smov 0  }
   0xe   :  { %s2227_s24 = smov 0   ;;  %s2229_s25 = smov 0  }
   0xf   :  { %s2231_s26 = smov 0   ;;  %s2233_s27 = smov 0  }
  0x10   :  { %s2235_s28 = smov 0  }
  0x11 LB: > { %2768 = sst [smem:[#allocation21_spill]] %s2112_s18  ;;  %s1729_s29 = sadd.s32 4294967295, %s2152_s28   ;;  %s2152_s28 = sphi %s2235_s28, %s23_s28   ;;  %s2148_s27 = sphi %s2233_s27, %s2807_s27   ;;  %s2144_s26 = sphi %s2231_s26, %s2806_s26   ;;  %s2140_s25 = sphi %s2229_s25, %s2805_s25   ;;  %s2136_s24 = sphi %s2227_s24, %s2804_s24   ;;  %s2132_s23 = sphi %s2225_s23, %s2803_s23   ;;  %s2128_s22 = sphi %s2223_s22, %s2802_s22   ;;  %s2124_s21 = sphi %s2221_s21, %s2801_s21   ;;  %s2120_s20 = sphi %s2219_s20, %s2810_s20   ;;  %s2116_s19 = sphi %s2217_s19, %s2809_s19   ;;  %s2112_s18 = sphi %s2215_s18, %s2808_s18  }
  0x12   : > { %2769 = sst [smem:[#allocation22_spill]] %s2128_s22  ;;  %s1730_s30 = sadd.s32 4294967294, %s2152_s28  }
  0x13   : > { %2770 = sst [smem:[#allocation23_spill]] %s2132_s23  ;;  %p76_p0 = scmp.ne.s32.totalorder %s2128_s22, %s2124_s21 }
  0x14   : > { %2771 = sst [smem:[#allocation24_spill]] %s2144_s26  ;;  %p2271_p1 = scmp.eq.s32.totalorder %s1729_s29, 0 }
  0x15   : > { %2772 = sst [smem:[#allocation25_spill]] %s2148_s27  ;;  %p101_p2 = scmp.ne.s32.totalorder %s2120_s20, %s2116_s19 }
  0x16   : > { %p102_p3 = scmp.eq.s32.totalorder %s1729_s29, 3  ;;  %p2279_p4 = por %p2271_p1, %p76_p0 }
  0x17   : > { %p107_p5 = scmp.ne.s32.totalorder %s2116_s19, %s2112_s18  ;;  %p108_p7 = scmp.eq.s32.totalorder %s1730_s30, 3 }
  0x18   : > { %p2285_p6 = por %p102_p3, %p101_p2  ;;  %p1731_p8 = scmp.ge.s32.totalorder %s2152_s28, 1 }
  0x19   : > { %p167_p9 = scmp.lt.s32.totalorder %s2152_s28, 5  ;;  %p2291_p10 = por %p108_p7, %p107_p5 }
  0x1a   : > { %s2775_s8 = scalar_select %p2285_p6, 1, 0 }
  0x1b   : > { %s2777_s9 = scalar_select %p2291_p10, 1, 0 }
  0x1c   : > { %2776 = sst [smem:[#allocation26_spill]] %s2775_s8  ;;  %p2295_p11 = pnand %p1731_p8, %p167_p9 }
  0x1d   : > { %2778 = sst [smem:[#allocation27_spill]] %s2777_s9  ;;  %s2154_s11 = smov [#allocation5]  }
  0x1e   : > { %s180_s12 = sshll.u32 %s2154_s11, 4  ;;  %p1783_p12 = pneg %p2295_p11  ;;  %s181_s12 = int_to_ptr.vmem [resolvable:$true] %s180_s12 }
  0x1f   : > { %s1931_s13 = scalar_lea.vmem %s181_s12, 256  ;;  %p1939_p7 = scmp.lt.s32.totalorder %s181_s12, %s181_s12 }
  0x20   : > { %p1784_p13 = pnand %p1783_p12, %p2271_p1  ;;  %p1932_p2 = scmp.ne.s32.totalorder %s181_s12, %s1931_s13 }
  0x21   : > { %p1940_p6 = scmp.lt.s32.totalorder %s1931_s13, %s1931_s13 }
  0x22   : > { %p1922_p0 = pneg %p1784_p13 }
  0x23   : > { %p1941_p10 = por %p1940_p6, %p1939_p7 }
  0x24   : > { %p1934_p3 = pnand %p1932_p2, %p1922_p0 }
  0x26   : > { %p1935_p5 = pneg %p1934_p3 }
  0x28   : > { %p1942_p8 = pnand %p1941_p10, %p1935_p5 }
  0x2a   : > { %1945 = shalt.err (!%p1942_p8)
}
  0x2b   : > { %s2780_s1 = sld [smem:[#allocation32_spill]]  ;;  %s32_s16 = sadd.s32 1, %s2144_s26 }
  0x2c   : > { %s35_s17 = sadd.s32 1, %s2148_s27  ;;  %p33_p6 = scmp.ge.s32.totalorder %s32_s16, 2 }
  0x2d   : > { %s63_s21 = sadd.s32 1, %s2132_s23  ;;  %p70_p9 = scmp.ne.s32.totalorder %s2132_s23, %s2128_s22 }
  0x2e   : > { %p71_p10 = scmp.eq.s32.totalorder %s2152_s28, 0  ;;  %s2812_s16 = smov (%p33_p6, %s32_s16), 0 }
  0x2f   : > { %2781 = sst [smem:[#allocation28_spill]] %s2812_s16  ;;  %s2814_s17 = smov (!%p33_p6, %s35_s17), %s2148_s27 }
  0x30   : > { %s60_s29 = ssub.s32 %s2144_s26, %s2812_s16  ;;  %p2317_p12 = por %p71_p10, %p70_p9 }
  0x31   : > { %1786 = dma.hbm_to_vmem [thread:$0]  (!%p1784_p13), %s2780_s1, 256, %s181_s12, [#allocation6]  }
  0x32   : > { %p37_p13 = scmp.ge.s32.totalorder %s2814_s17, 2  ;;  %p61_p0 = scmp.eq.s32.totalorder %s60_s29, 0 }
  0x33   : > { %s91_s11 = sadd.s32 1, %s2120_s20  ;;  %p1796_p2 = scmp.lt.s32.totalorder %s2152_s28, 4 }
  0x34   : > { %s2816_s17 = smov (%p37_p13, %s2814_s17), 0  ;;  %s191_s14 = sand.u32 1, %s2132_s23  }
  0x35   : > { %2783 = sst [smem:[#allocation29_spill]] %s2816_s17  ;;  %s86_s13 = ssub.s32 %s2148_s27, %s2816_s17 }
  0x36   : > { %s2326_s12 = scalar_select %p61_p0, %s2132_s23, %s63_s21  }
  0x37   : > { %s88_s15 = sor.u32 %s86_s13, %s60_s29  ;;  %s1734_s1 = sshll.u32 %s191_s14, 2 }
  0x38   : > { %2784 = sst [smem:[#allocation30_spill]] %s2326_s12  ;;  %p89_p3 = scmp.eq.s32.totalorder %s88_s15, 0 }
  0x39   : > { %s1765_s16 = sshll.u32 %s2144_s26, 6  ;;  %s2785_s2 = sld [smem:[#allocation33_spill]] }
  0x3a   : > { %s2333_s9 = scalar_select %p89_p3, %s2120_s20, %s91_s11  }
  0x3b   : > { %s195_s0 = scalar_lea.vmem [#allocation8], %s1734_s1  ;;  %p2342_p5 = pnand %p1796_p2, %p2317_p12 }
  0x3c   : > { %s203_s5 = sshll.u32 %s195_s0, 4  ;;  %s192_s29 = scalar_lea.sflag [#allocation9], %s191_s14  ;;  %s204_s5 = int_to_ptr.vmem [resolvable:$true] %s203_s5 }
  0x3d   : > { %p1948_p7 = pneg %p2342_p5  ;;  %s1959_s13 = scalar_lea.vmem %s204_s5, 64 }
  0x3e   : > { %p1960_p8 = scmp.ne.s32.totalorder %s204_s5, %s1959_s13  ;;  %s2155_s11 = smov [#allocation8]  }
  0x3f   : > { %s201_s8 = scalar_lea.hbm %s2785_s2, %s1765_s16  ;;  %s1964_s3 = sshll.u32 %s2155_s11, 4  ;;  %s1965_s3 = int_to_ptr.vmem [resolvable:$false] %s1964_s3 }
  0x40   : > { %p1962_p6 = pnand %p1960_p8, %p1948_p7  ;;  %s1966_s1 = scalar_lea.vmem %s1965_s3, 128 }
  0x41   : > { %p1967_p10 = scmp.lt.s32.totalorder %s204_s5, %s1965_s3  ;;  %p1968_p13 = scmp.lt.s32.totalorder %s1966_s1, %s1959_s13 }
  0x42   : > { %p1963_p9 = pneg %p1962_p6 }
  0x43   : > { %p1969_p0 = por %p1968_p13, %p1967_p10 }
  0x45   : > { %p1970_p3 = pnand %p1969_p0, %p1963_p9 }
  0x47   : > { %1973 = shalt.err (!%p1970_p3)
}
  0x48   : > { %1790 = dma.hbm_to_vmem [thread:$0]  (!%p2342_p5), %s201_s8, 64, %s204_s5, %s192_s29  }
  0x49   : > { %212 = sbr.rel (%p2295_p11) target bundleno = 944 (0x3b0), region = 28 }
  0x4e   : > { %2097 = dma.done.wait (%p2271_p1), [#allocation6], 256  }
  0x4f   : > { %2099 = vsyncadd (%p2271_p1), [#allocation6], 4294967040  ;;  %s218_s0 = sand.u32 1, %s2128_s22  }
  0x50   : > { %s2357_s18 = sshll.u32 %s218_s0, 2  ;;  %s219_s16 = scalar_lea.sflag [#allocation9], %s218_s0 }
  0x51   : > { %2101 = dma.done.wait (%p2279_p4), %s219_s16, 64  }
  0x52   : > { %2103 = vsyncadd (%p2279_p4), %s219_s16, 4294967232  ;;  %s2754_s5 = sand.u32 1, %s2116_s19   ;;  %p257_p1 = scmp.lt.s32.totalorder %s2140_s25, 1 }
  0x53   : > { %s2368_s6 = sshll.u32 %s2754_s5, 5  ;;  %p265_p11 = scmp.lt.s32.totalorder %s2136_s24, 0 }
  0x54   : > { %s266_s8 = ssub.s32 0, %s2136_s24  ;;  %p1746_p4 = scmp.ne.s32.totalorder %s2136_s24, 0 }
  0x55   : > { %s258_s10 = scalar_select %p257_p1, %s2140_s25, 1 }
  0x56   : > { %s1743_s7 = smin.u32 %s2136_s24, %s266_s8  ;;  %s2787_s4 = sld [smem:[#allocation35_spill]] }
  0x57   : > { %s1741_s14 = sshll.u32 %s258_s10, 3  ;;  %s268_s15 = sand.u32 1, %s1743_s7  }
  0x58   : > { %s2788_s1 = sld [smem:[#allocation36_spill]]  ;;  %s269_s16 = ssub.s32 0, %s268_s15 }
  0x59   : > { %p1798_p12 = scmp.eq.s32.totalorder %s2136_s24, 0  ;;  %s2818_s16 = smov (!%p265_p11, %s269_s16), %s268_s15 }
  0x5a   : > { %s1766_s5 = smul.u32 1280, %s2140_s25  ;;  %p1745_p2 = scmp.lt.s32.totalorder %s2818_s16, 0 }
  0x5b   : > { %s275_s8 = sadd.s32 2, %s2818_s16  ;;  %s2789_s7 = sld [smem:[#allocation31_spill]] }
  0x5c   : > { %s2378_s13 = scalar_lea.vmem %s2787_s4, %s1741_s14  ;;  %s2156_s17 = smov [#allocation2]  }
  0x5d   : > { %s292_s21 = sshll.u32 %s2156_s17, 4  ;;  %s2820_s8 = smov (!%p1745_p2, %s275_s8), %s2818_s16  ;;  %s2392_s21 = int_to_ptr.vmem [resolvable:$true] %s292_s21 }
  0x5e   : > { %s2383_s0 = scalar_lea.vmem %s2788_s1, %s1741_s14 }
  0x61   : > { %s284_s2 = scalar_lea.hbm %s2789_s7, %s1766_s5  ;;  %s2757_s11 = scalar_lea.hbm %s2789_s7, 2560 }
  0x62   : > { %s1974_s29 = scalar_lea.hbm %s284_s2, 768  ;;  %p1979_p6 = scmp.lt.s32.totalorder %s284_s2, %s2789_s7 }
  0x63   : > { %p1975_p5 = scmp.ne.s32.totalorder %s284_s2, %s1974_s29  ;;  %p1980_p9 = scmp.lt.s32.totalorder %s2757_s11, %s1974_s29 }
  0x65   : > { %p1976_p7 = pnand %p1975_p5, %p1798_p12  ;;  %p1981_p10 = por %p1980_p9, %p1979_p6 }
  0x67   : > { %p1977_p8 = pneg %p1976_p7 }
  0x69   : > { %p1982_p13 = pnand %p1981_p10, %p1977_p8 }
  0x6b   : > { %1985 = shalt.err (!%p1982_p13)  }
  0x6c   : > { %s1986_s17 = scalar_lea.vmem %s2392_s21, 768  ;;  %s2756_s16 = scalar_lea.vmem %s2392_s21, 1536 }
  0x6d   : > { %p1987_p0 = scmp.ne.s32.totalorder %s2392_s21, %s1986_s17  ;;  %p1993_p11 = scmp.lt.s32.totalorder %s2392_s21, %s2392_s21 }
  0x6e   : > { %p1994_p2 = scmp.lt.s32.totalorder %s2756_s16, %s1986_s17 }
  0x6f   : > { %p1988_p3 = pnand %p1987_p0, %p1798_p12 }
  0x70   : > { %p1995_p5 = por %p1994_p2, %p1993_p11 }
  0x71   : > { %p1989_p1 = pneg %p1988_p3 }
  0x73   : > { %p1996_p7 = pnand %p1995_p5, %p1989_p1 }
  0x75   : > { %1999 = shalt.err (!%p1996_p7)  }
  0x76   : > { %1778 = dma.hbm_to_vmem [thread:$0]  (%p1798_p12), %s284_s2, 768, %s2392_s21, [#allocation4] }
  0x77   : > { %s1767_s10 = smul.u32 48, %s2820_s8  ;;  %s2420_s29 = scalar_lea.vmem [#allocation10], %s2368_s6 }
  0x78   : > { %s300_s15 = scalar_lea.sflag [#allocation4], %s2820_s8 }
  0x79   : > { %s2422_s14 = scalar_lea.vmem [#allocation2], %s1767_s10 }
  0x7a   : > { %2104 = dma.done.wait %s300_s15, 768 }
  0x7b   : > { %2105 = vsyncadd %s300_s15, 4294966528  ;;  %s305_s3 = sadd.s32 1, %s2136_s24  ;;  %s310_s1 = ssub.s32 1, %s2820_s8 }
  0x7c   : > { %p2427_p8 = scmp.lt.s32.totalorder %s305_s3, 2  ;;  %s1768_s2 = sshll.u32 %s2136_s24, 9 }
  0x7d   : > { %s314_s5 = smul.u32 10, %s2140_s25  ;;  %s1769_s6 = sadd.s32 512, %s1768_s2 }
  0x7e   : > { %s1770_s17 = smul.u32 48, %s310_s1  ;;  %s312_s10 = sshra.s32 %s1769_s6, 7 }
  0x7f   : > { %s315_s16 = sadd.s32 %s314_s5, %s312_s10  ;;  %s321_s8 = scalar_lea.sflag [#allocation4], %s310_s1 }
  0x80   : > { %s1751_s11 = sshll.u32 %s315_s16, 7  ;;  %s320_s4 = scalar_lea.vmem [#allocation2], %s1770_s17 }
  0x81   : > { %s329_s15 = sshll.u32 %s320_s4, 4  ;;  %s317_s12 = scalar_lea.hbm %s2789_s7, %s1751_s11  ;;  %s330_s15 = int_to_ptr.vmem [resolvable:$true] %s329_s15 }
  0x82   : > { %s2000_s3 = scalar_lea.hbm %s317_s12, 768  ;;  %p2005_p10 = scmp.lt.s32.totalorder %s317_s12, %s2789_s7 }
  0x83   : > { %p2001_p12 = scmp.ne.s32.totalorder %s317_s12, %s2000_s3  ;;  %s2791_s16 = scalar_lea.hbm %s2789_s7, 2560 }
  0x84   : > { %p2006_p13 = scmp.lt.s32.totalorder %s2791_s16, %s2000_s3 }
  0x85   : > { %p2002_p6 = pnand %p2001_p12, %p2427_p8 }
  0x86   : > { %p2007_p0 = por %p2006_p13, %p2005_p10 }
  0x87   : > { %p2003_p9 = pneg %p2002_p6 }
  0x89   : > { %p2008_p3 = pnand %p2007_p0, %p2003_p9 }
  0x8b   : > { %2011 = shalt.err (!%p2008_p3)  }
  0x8c   : > { %s2012_s4 = scalar_lea.vmem %s330_s15, 768  ;;  %p2019_p5 = scmp.lt.s32.totalorder %s330_s15, %s2392_s21 }
  0x8d   : > { %p2013_p1 = scmp.ne.s32.totalorder %s330_s15, %s2012_s4  ;;  %s2792_s26 = scalar_lea.vmem %s2392_s21, 1536 }
  0x8e   : > { %p2020_p7 = scmp.lt.s32.totalorder %s2792_s26, %s2012_s4 }
  0x8f   : > { %p2014_p11 = pnand %p2013_p1, %p2427_p8 }
  0x90   : > { %p2021_p12 = por %p2020_p7, %p2019_p5 }
  0x91   : > { %p2015_p2 = pneg %p2014_p11 }
  0x93   : > { %p2022_p6 = pnand %p2021_p12, %p2015_p2 }
  0x95   : > { %2025 = shalt.err (!%p2022_p6)  }
  0x96   : > { %1780 = dma.hbm_to_vmem [thread:$0]  (%p2427_p8), %s317_s12, 768, %s330_s15, %s321_s8  ;;  %vm823_vm0 = vcmask 64512   ;;  %vm790_vm1 = vcmask 130048   ;;  %vm757_vm2 = vcmask 138240   ;;  %vm724_vm3 = vcmask 146432  }
  0x97   : > { %v2453_v0 = vld [vmem:[%s2422_s14 + $0x18] sm:$0xff]  ;;  %v2456_v1 = vld [vmem:[%s2422_s14 + $0x8] sm:$0xff]  ;;  %s2157_s22 = smov 8   ;;  %v2461_v2 = vld [vmem:[%s2422_s14 + $0x20] sm:$0xff]  ;;  %s2158_s23 = smov 16   ;;  %vm691_vm4 = vcmask 211968  }
  0x98   : > { %819 = vrot.lane.b32.xlu1 %v2453_v0, %s2157_s22  ;;  %815 = vrot.lane.b32.xlu0 %v2456_v1, %s2157_s22  ;;  %v2464_v3 = vld [vmem:[%s2422_s14 + $0x10] sm:$0xff]  ;;  %v2469_v4 = vld [vmem:[%s2422_s14] sm:$0xff]  ;;  %s2159_s27 = smov 17   ;;  %s2160_s12 = smov 18   ;;  %vm658_vm5 = vcmask 220160   ;;  %vm625_vm6 = vcmask 228352  }
  0x99   : > { %s2161_s21 = smov 26   ;;  %s2162_s11 = smov 27   ;;  %v2558_v43 = vld [vmem:[%s2422_s14 + $0x28] sm:$0xff]  ;;  %vm592_vm7 = vcmask 867328   ;;  %vm559_vm8 = vcmask 875520   ;;  %vm526_vm9 = vcmask 883712  }
  0x9a   : > { %s2163_s1 = smov 28   ;;  %s2164_s30 = smov 106   ;;  %vm493_vm10 = vcmask 949248   ;;  %vm460_vm11 = vcmask 957440   ;;  %vm427_vm12 = vcmask 965632   ;;  %vm394_vm13 = vcmask 1031168  }
  0x9b   : > { %s2165_s6 = smov 107   ;;  %s2166_s17 = smov 108   ;;  %vm1309_vm14 = vcmask 719872   ;;  %vm361_vm15 = vcmask 1039360  }
  0x9c   : > { %821 = vrot.lane.b32.xlu1 %v2461_v2, %s2157_s22  ;;  %817 = vrot.lane.b32.xlu0 %v2464_v3, %s2157_s22  ;;  %s2167_s10 = smov 116   ;;  %s2168_s15 = smov 117  }
  0x9d   : > { %s2169_s8 = smov 118   ;;  %s2170_s3 = smov 126  }
  0x9e   : > { %s2171_s2 = smov 127   ;;  %s2172_s5 = smov 34  }
  0x9f   : > { %s2173_s16 = smov 35   ;;  %s2174_s14 = smov 36  }
  0xa0   : > { %813 = vrot.lane.b32.xlu0 %v2469_v4, %s2157_s22  ;;  %782 = vrot.lane.b32.xlu1 %v2456_v1, %s2158_s23  ;;  %s2175_s4 = smov 44   ;;  %s2176_s26 = smov 45  }
  0xa1   : > { %s2177_s22 = smov 46  }
  0xa4   : > { %784 = vrot.lane.b32.xlu0 %v2464_v3, %s2158_s23  ;;  %786 = vrot.lane.b32.xlu1 %v2453_v0, %s2158_s23 }
  0xa8   : > { %788 = vrot.lane.b32.xlu0 %v2461_v2, %s2158_s23  ;;  %780 = vrot.lane.b32.xlu1 %v2469_v4, %s2158_s23  ;;  %s2178_s23 = smov 54  }
  0xac   : > { %751 = vrot.lane.b32.xlu1 %v2464_v3, %s2159_s27  ;;  %749 = vrot.lane.b32.xlu0 %v2456_v1, %s2159_s27 }
  0xb0   : > { %755 = vrot.lane.b32.xlu1 %v2461_v2, %s2159_s27  ;;  %753 = vrot.lane.b32.xlu0 %v2453_v0, %s2159_s27 }
  0xb4   : > { %747 = vrot.lane.b32.xlu0 %v2469_v4, %s2159_s27  ;;  %716 = vrot.lane.b32.xlu1 %v2456_v1, %s2160_s12  ;;  %s2179_s27 = smov 55  }
  0xb8   : > { %718 = vrot.lane.b32.xlu0 %v2464_v3, %s2160_s12  ;;  %720 = vrot.lane.b32.xlu1 %v2453_v0, %s2160_s12 }
  0xbc   : > { %722 = vrot.lane.b32.xlu0 %v2461_v2, %s2160_s12  ;;  %714 = vrot.lane.b32.xlu1 %v2469_v4, %s2160_s12  ;;  %s2180_s12 = smov 56  }
  0xc0   : > { %685 = vrot.lane.b32.xlu1 %v2464_v3, %s2161_s21  ;;  %683 = vrot.lane.b32.xlu0 %v2456_v1, %s2161_s21 }
  0xc4   : > { %689 = vrot.lane.b32.xlu1 %v2461_v2, %s2161_s21  ;;  %687 = vrot.lane.b32.xlu0 %v2453_v0, %s2161_s21 }
  0xc8   : > { %681 = vrot.lane.b32.xlu0 %v2469_v4, %s2161_s21  ;;  %650 = vrot.lane.b32.xlu1 %v2456_v1, %s2162_s11  ;;  %s2181_s21 = smov 6  }
  0xcc   : > { %652 = vrot.lane.b32.xlu0 %v2464_v3, %s2162_s11  ;;  %654 = vrot.lane.b32.xlu1 %v2453_v0, %s2162_s11 }
  0xd0   : > { %656 = vrot.lane.b32.xlu0 %v2461_v2, %s2162_s11  ;;  %648 = vrot.lane.b32.xlu1 %v2469_v4, %s2162_s11  ;;  %s2182_s11 = smov 7  }
  0xd4   : > { %619 = vrot.lane.b32.xlu1 %v2464_v3, %s2163_s1  ;;  %617 = vrot.lane.b32.xlu0 %v2456_v1, %s2163_s1 }
  0xd8   : > { %623 = vrot.lane.b32.xlu1 %v2461_v2, %s2163_s1  ;;  %621 = vrot.lane.b32.xlu0 %v2453_v0, %s2163_s1 }
  0xdc   : > { %615 = vrot.lane.b32.xlu0 %v2469_v4, %s2163_s1  ;;  %584 = vrot.lane.b32.xlu1 %v2456_v1, %s2164_s30 }
  0xe0   : > { %586 = vrot.lane.b32.xlu0 %v2464_v3, %s2164_s30  ;;  %588 = vrot.lane.b32.xlu1 %v2453_v0, %s2164_s30 }
  0xe4   : > { %590 = vrot.lane.b32.xlu0 %v2461_v2, %s2164_s30  ;;  %582 = vrot.lane.b32.xlu1 %v2469_v4, %s2164_s30 }
  0xe8   : > { %553 = vrot.lane.b32.xlu1 %v2464_v3, %s2165_s6  ;;  %551 = vrot.lane.b32.xlu0 %v2456_v1, %s2165_s6 }
  0xec   : > { %557 = vrot.lane.b32.xlu1 %v2461_v2, %s2165_s6  ;;  %555 = vrot.lane.b32.xlu0 %v2453_v0, %s2165_s6 }
  0xf0   : > { %549 = vrot.lane.b32.xlu0 %v2469_v4, %s2165_s6  ;;  %518 = vrot.lane.b32.xlu1 %v2456_v1, %s2166_s17 }
  0xf4   : > { %520 = vrot.lane.b32.xlu0 %v2464_v3, %s2166_s17  ;;  %522 = vrot.lane.b32.xlu1 %v2453_v0, %s2166_s17 }
  0xf8   : > { %524 = vrot.lane.b32.xlu0 %v2461_v2, %s2166_s17  ;;  %516 = vrot.lane.b32.xlu1 %v2469_v4, %s2166_s17 }
  0xfc   : > { %487 = vrot.lane.b32.xlu1 %v2464_v3, %s2167_s10  ;;  %485 = vrot.lane.b32.xlu0 %v2456_v1, %s2167_s10 }
 0x100   : > { %491 = vrot.lane.b32.xlu1 %v2461_v2, %s2167_s10  ;;  %489 = vrot.lane.b32.xlu0 %v2453_v0, %s2167_s10 }
 0x104   : > { %483 = vrot.lane.b32.xlu0 %v2469_v4, %s2167_s10  ;;  %452 = vrot.lane.b32.xlu1 %v2456_v1, %s2168_s15 }
 0x108   : > { %454 = vrot.lane.b32.xlu0 %v2464_v3, %s2168_s15  ;;  %456 = vrot.lane.b32.xlu1 %v2453_v0, %s2168_s15 }
 0x10a   : > { %v820_v5 = vpop.permute.xlu1 %819  ;;  %v816_v6 = vpop.permute.xlu0 %815 }
 0x10c   : > { %458 = vrot.lane.b32.xlu0 %v2461_v2, %s2168_s15  ;;  %450 = vrot.lane.b32.xlu1 %v2469_v4, %s2168_s15 }
 0x10e   : > { %v822_v7 = vpop.permute.xlu1 %821  ;;  %v818_v8 = vpop.permute.xlu0 %817 }
 0x10f   : > { %v825_v9 = vsel %vm823_vm0, %v816_v6, %v818_v8  ;;  %v827_v10 = vsel %vm823_vm0, %v820_v5, %v822_v7  ;;  %v826_v11 = vsel %vm823_vm0, %v818_v8, %v820_v5 }
 0x110   : > { %1313 = vmatprep.subr.mxu0 %v825_v9  ;;  %1384 = vmatprep.subr.mxu1 %v827_v10 }
 0x111   : > { %421 = vrot.lane.b32.xlu1 %v2464_v3, %s2169_s8  ;;  %419 = vrot.lane.b32.xlu0 %v2456_v1, %s2169_s8 }
 0x112   : > { %1385 = vmatpush1.msra.mxu1 %v826_v11  ;;  %v814_v12 = vpop.permute.xlu0 %813  ;;  %v783_v13 = vpop.permute.xlu1 %782 }
 0x113   : > { %v824_v14 = vsel %vm823_vm0, %v814_v12, %v816_v6  ;;  %vm1186_vm0 = vcmask 277504  }
 0x114   : > { %1314 = vmatpush1.msra.mxu0 %v824_v14 }
 0x115   : > { %425 = vrot.lane.b32.xlu1 %v2461_v2, %s2169_s8  ;;  %423 = vrot.lane.b32.xlu0 %v2453_v0, %s2169_s8 }
 0x116   : > { %v785_v15 = vpop.permute.xlu0 %784  ;;  %v787_v16 = vpop.permute.xlu1 %786 }
 0x117   : > { %v792_v17 = vsel %vm790_vm1, %v783_v13, %v785_v15  ;;  %v793_v22 = vsel %vm790_vm1, %v785_v15, %v787_v16 }
 0x118   : > { %1315 = vmatprep.subr.mxu0 %v792_v17 }
 0x119   : > { %417 = vrot.lane.b32.xlu0 %v2469_v4, %s2169_s8  ;;  %386 = vrot.lane.b32.xlu1 %v2456_v1, %s2170_s3 }
 0x11a   : > { %v789_v18 = vpop.permute.xlu0 %788  ;;  %v781_v19 = vpop.permute.xlu1 %780 }
 0x11b   : > { %v791_v20 = vsel %vm790_vm1, %v781_v19, %v783_v13  ;;  %v794_v21 = vsel %vm790_vm1, %v787_v16, %v789_v18  ;;  %vm1153_vm1 = vcmask 285696  }
 0x11c   : > { %1316 = vmatpush1.msra.mxu0 %v791_v20  ;;  %1386 = vmatprep.subr.mxu1 %v794_v21 }
 0x11d   : > { %388 = vrot.lane.b32.xlu0 %v2464_v3, %s2170_s3  ;;  %390 = vrot.lane.b32.xlu1 %v2453_v0, %s2170_s3 }
 0x11e   : > { %1387 = vmatpush1.msra.mxu1 %v793_v22  ;;  %v752_v23 = vpop.permute.xlu1 %751  ;;  %v750_v24 = vpop.permute.xlu0 %749 }
 0x11f   : > { %v759_v25 = vsel %vm757_vm2, %v750_v24, %v752_v23 }
 0x120   : > { %1317 = vmatprep.subr.mxu0 %v759_v25 }
 0x121   : > { %392 = vrot.lane.b32.xlu0 %v2461_v2, %s2170_s3  ;;  %384 = vrot.lane.b32.xlu1 %v2469_v4, %s2170_s3 }
 0x122   : > { %v756_v26 = vpop.permute.xlu1 %755  ;;  %v754_v27 = vpop.permute.xlu0 %753 }
 0x123   : > { %v761_v28 = vsel %vm757_vm2, %v754_v27, %v756_v26  ;;  %v760_v29 = vsel %vm757_vm2, %v752_v23, %v754_v27 }
 0x124   : > { %1388 = vmatprep.subr.mxu1 %v761_v28 }
 0x125   : > { %355 = vrot.lane.b32.xlu1 %v2464_v3, %s2171_s2  ;;  %353 = vrot.lane.b32.xlu0 %v2456_v1, %s2171_s2 }
 0x126   : > { %1389 = vmatpush1.msra.mxu1 %v760_v29  ;;  %v748_v30 = vpop.permute.xlu0 %747  ;;  %v717_v31 = vpop.permute.xlu1 %716 }
 0x127   : > { %v758_v32 = vsel %vm757_vm2, %v748_v30, %v750_v24  ;;  %vm1120_vm2 = vcmask 293888  }
 0x128   : > { %1318 = vmatpush1.msra.mxu0 %v758_v32 }
 0x129   : > { %359 = vrot.lane.b32.xlu1 %v2461_v2, %s2171_s2  ;;  %357 = vrot.lane.b32.xlu0 %v2453_v0, %s2171_s2 }
 0x12a   : > { %v719_v33 = vpop.permute.xlu0 %718  ;;  %v721_v34 = vpop.permute.xlu1 %720 }
 0x12b   : > { %v726_v35 = vsel %vm724_vm3, %v717_v31, %v719_v33  ;;  %v727_v40 = vsel %vm724_vm3, %v719_v33, %v721_v34 }
 0x12c   : > { %1319 = vmatprep.subr.mxu0 %v726_v35 }
 0x12d   : > { %1178 = vrot.lane.b32.xlu1 %v2464_v3, %s2172_s5  ;;  %351 = vrot.lane.b32.xlu0 %v2469_v4, %s2171_s2 }
 0x12e   : > { %v723_v36 = vpop.permute.xlu0 %722  ;;  %v715_v37 = vpop.permute.xlu1 %714 }
 0x12f   : > { %v725_v38 = vsel %vm724_vm3, %v715_v37, %v717_v31  ;;  %v728_v39 = vsel %vm724_vm3, %v721_v34, %v723_v36  ;;  %vm1087_vm3 = vcmask 359424  }
 0x130   : > { %1320 = vmatpush1.msra.mxu0 %v725_v38  ;;  %1390 = vmatprep.subr.mxu1 %v728_v39 }
 0x131   : > { %1182 = vrot.lane.b32.xlu1 %v2461_v2, %s2172_s5  ;;  %1180 = vrot.lane.b32.xlu0 %v2453_v0, %s2172_s5 }
 0x132   : > { %1391 = vmatpush1.msra.mxu1 %v727_v40  ;;  %v686_v41 = vpop.permute.xlu1 %685  ;;  %v684_v42 = vpop.permute.xlu0 %683 }
 0x133   : > { %v693_v44 = vsel %vm691_vm4, %v684_v42, %v686_v41 }
 0x134   : > { %1321 = vmatprep.subr.mxu0 %v693_v44 }
 0x135   : > { %1176 = vrot.lane.b32.xlu1 %v2456_v1, %s2172_s5  ;;  %1184 = vrot.lane.b32.xlu0 %v2558_v43, %s2172_s5 }
 0x136   : > { %v690_v45 = vpop.permute.xlu1 %689  ;;  %v688_v46 = vpop.permute.xlu0 %687 }
 0x137   : > { %v695_v47 = vsel %vm691_vm4, %v688_v46, %v690_v45  ;;  %v694_v48 = vsel %vm691_vm4, %v686_v41, %v688_v46 }
 0x138   : > { %1392 = vmatprep.subr.mxu1 %v695_v47 }
 0x139   : > { %1147 = vrot.lane.b32.xlu1 %v2453_v0, %s2173_s16  ;;  %1145 = vrot.lane.b32.xlu0 %v2464_v3, %s2173_s16 }
 0x13a   : > { %1393 = vmatpush1.msra.mxu1 %v694_v48  ;;  %v682_v49 = vpop.permute.xlu0 %681  ;;  %v651_v50 = vpop.permute.xlu1 %650 }
 0x13b   : > { %v692_v51 = vsel %vm691_vm4, %v682_v49, %v684_v42  ;;  %vm1054_vm4 = vcmask 367616  }
 0x13c   : > { %1322 = vmatpush1.msra.mxu0 %v692_v51 }
 0x13d   : > { %1151 = vrot.lane.b32.xlu1 %v2558_v43, %s2173_s16  ;;  %1149 = vrot.lane.b32.xlu0 %v2461_v2, %s2173_s16 }
 0x13e   : > { %v653_v52 = vpop.permute.xlu0 %652  ;;  %v655_v53 = vpop.permute.xlu1 %654 }
 0x13f   : > { %v660_v54 = vsel %vm658_vm5, %v651_v50, %v653_v52  ;;  %v661_v59 = vsel %vm658_vm5, %v653_v52, %v655_v53 }
 0x140   : > { %1323 = vmatprep.subr.mxu0 %v660_v54 }
 0x141   : > { %1112 = vrot.lane.b32.xlu1 %v2464_v3, %s2174_s14  ;;  %1143 = vrot.lane.b32.xlu0 %v2456_v1, %s2173_s16 }
 0x142   : > { %v657_v55 = vpop.permute.xlu0 %656  ;;  %v649_v56 = vpop.permute.xlu1 %648 }
 0x143   : > { %v659_v57 = vsel %vm658_vm5, %v649_v56, %v651_v50  ;;  %v662_v58 = vsel %vm658_vm5, %v655_v53, %v657_v55  ;;  %vm1021_vm5 = vcmask 375808  }
 0x144   : > { %1324 = vmatpush1.msra.mxu0 %v659_v57  ;;  %1394 = vmatprep.subr.mxu1 %v662_v58 }
 0x145   : > { %1116 = vrot.lane.b32.xlu1 %v2461_v2, %s2174_s14  ;;  %1114 = vrot.lane.b32.xlu0 %v2453_v0, %s2174_s14 }
 0x146   : > { %1395 = vmatpush1.msra.mxu1 %v661_v59  ;;  %v620_v60 = vpop.permute.xlu1 %619  ;;  %v618_v61 = vpop.permute.xlu0 %617 }
 0x147   : > { %v627_v62 = vsel %vm625_vm6, %v618_v61, %v620_v60 }
 0x148   : > { %1325 = vmatprep.subr.mxu0 %v627_v62 }
 0x149   : > { %1110 = vrot.lane.b32.xlu1 %v2456_v1, %s2174_s14  ;;  %1118 = vrot.lane.b32.xlu0 %v2558_v43, %s2174_s14 }
 0x14a   : > { %v624_v63 = vpop.permute.xlu1 %623  ;;  %v622_v5 = vpop.permute.xlu0 %621 }
 0x14b   : > { %v629_v6 = vsel %vm625_vm6, %v622_v5, %v624_v63  ;;  %v628_v7 = vsel %vm625_vm6, %v620_v60, %v622_v5 }
 0x14c   : > { %1396 = vmatprep.subr.mxu1 %v629_v6 }
 0x14d   : > { %1081 = vrot.lane.b32.xlu1 %v2453_v0, %s2175_s4  ;;  %1079 = vrot.lane.b32.xlu0 %v2464_v3, %s2175_s4 }
 0x14e   : > { %1397 = vmatpush1.msra.mxu1 %v628_v7  ;;  %v616_v8 = vpop.permute.xlu0 %615  ;;  %v585_v9 = vpop.permute.xlu1 %584 }
 0x14f   : > { %v626_v10 = vsel %vm625_vm6, %v616_v8, %v618_v61  ;;  %vm988_vm6 = vcmask 441344  }
 0x150   : > { %1326 = vmatpush1.msra.mxu0 %v626_v10 }
 0x151   : > { %1085 = vrot.lane.b32.xlu1 %v2558_v43, %s2175_s4  ;;  %1083 = vrot.lane.b32.xlu0 %v2461_v2, %s2175_s4 }
 0x152   : > { %v587_v11 = vpop.permute.xlu0 %586  ;;  %v589_v12 = vpop.permute.xlu1 %588 }
 0x153   : > { %v594_v13 = vsel %vm592_vm7, %v585_v9, %v587_v11  ;;  %v595_v18 = vsel %vm592_vm7, %v587_v11, %v589_v12 }
 0x154   : > { %1327 = vmatprep.subr.mxu0 %v594_v13 }
 0x155   : > { %1046 = vrot.lane.b32.xlu1 %v2464_v3, %s2176_s26  ;;  %1077 = vrot.lane.b32.xlu0 %v2456_v1, %s2175_s4 }
 0x156   : > { %v591_v14 = vpop.permute.xlu0 %590  ;;  %v583_v15 = vpop.permute.xlu1 %582 }
 0x157   : > { %v593_v16 = vsel %vm592_vm7, %v583_v15, %v585_v9  ;;  %v596_v17 = vsel %vm592_vm7, %v589_v12, %v591_v14  ;;  %vm955_vm7 = vcmask 449536  }
 0x158   : > { %1328 = vmatpush1.msra.mxu0 %v593_v16  ;;  %1398 = vmatprep.subr.mxu1 %v596_v17 }
 0x159   : > { %1050 = vrot.lane.b32.xlu1 %v2461_v2, %s2176_s26  ;;  %1048 = vrot.lane.b32.xlu0 %v2453_v0, %s2176_s26 }
 0x15a   : > { %1399 = vmatpush1.msra.mxu1 %v595_v18  ;;  %v554_v19 = vpop.permute.xlu1 %553  ;;  %v552_v20 = vpop.permute.xlu0 %551 }
 0x15b   : > { %v561_v21 = vsel %vm559_vm8, %v552_v20, %v554_v19 }
 0x15c   : > { %1329 = vmatprep.subr.mxu0 %v561_v21 }
 0x15d   : > { %1044 = vrot.lane.b32.xlu1 %v2456_v1, %s2176_s26  ;;  %1052 = vrot.lane.b32.xlu0 %v2558_v43, %s2176_s26 }
 0x15e   : > { %v558_v22 = vpop.permute.xlu1 %557  ;;  %v556_v23 = vpop.permute.xlu0 %555 }
 0x15f   : > { %v563_v24 = vsel %vm559_vm8, %v556_v23, %v558_v22  ;;  %v562_v25 = vsel %vm559_vm8, %v554_v19, %v556_v23 }
 0x160   : > { %1400 = vmatprep.subr.mxu1 %v563_v24 }
 0x161   : > { %1015 = vrot.lane.b32.xlu1 %v2453_v0, %s2177_s22  ;;  %1013 = vrot.lane.b32.xlu0 %v2464_v3, %s2177_s22 }
 0x162   : > { %1401 = vmatpush1.msra.mxu1 %v562_v25  ;;  %v550_v26 = vpop.permute.xlu0 %549  ;;  %v519_v27 = vpop.permute.xlu1 %518 }
 0x163   : > { %v560_v28 = vsel %vm559_vm8, %v550_v26, %v552_v20  ;;  %vm922_vm8 = vcmask 457728  }
 0x164   : > { %1330 = vmatpush1.msra.mxu0 %v560_v28 }
 0x165   : > { %1019 = vrot.lane.b32.xlu1 %v2558_v43, %s2177_s22  ;;  %1017 = vrot.lane.b32.xlu0 %v2461_v2, %s2177_s22 }
 0x166   : > { %v521_v29 = vpop.permute.xlu0 %520  ;;  %v523_v30 = vpop.permute.xlu1 %522 }
 0x167   : > { %v528_v31 = vsel %vm526_vm9, %v519_v27, %v521_v29  ;;  %v529_v36 = vsel %vm526_vm9, %v521_v29, %v523_v30 }
 0x168   : > { %1331 = vmatprep.subr.mxu0 %v528_v31 }
 0x169   : > { %980 = vrot.lane.b32.xlu1 %v2464_v3, %s2178_s23  ;;  %1011 = vrot.lane.b32.xlu0 %v2456_v1, %s2177_s22 }
 0x16a   : > { %v525_v32 = vpop.permute.xlu0 %524  ;;  %v517_v33 = vpop.permute.xlu1 %516 }
 0x16b   : > { %v527_v34 = vsel %vm526_vm9, %v517_v33, %v519_v27  ;;  %v530_v35 = vsel %vm526_vm9, %v523_v30, %v525_v32  ;;  %vm889_vm9 = vcmask 48128  }
 0x16c   : > { %1332 = vmatpush1.msra.mxu0 %v527_v34  ;;  %1402 = vmatprep.subr.mxu1 %v530_v35 }
 0x16d   : > { %984 = vrot.lane.b32.xlu1 %v2461_v2, %s2178_s23  ;;  %982 = vrot.lane.b32.xlu0 %v2453_v0, %s2178_s23 }
 0x16e   : > { %1403 = vmatpush1.msra.mxu1 %v529_v36  ;;  %v488_v37 = vpop.permute.xlu1 %487  ;;  %v486_v38 = vpop.permute.xlu0 %485 }
 0x16f   : > { %v495_v39 = vsel %vm493_vm10, %v486_v38, %v488_v37 }
 0x170   : > { %1333 = vmatprep.subr.mxu0 %v495_v39 }
 0x171   : > { %978 = vrot.lane.b32.xlu1 %v2456_v1, %s2178_s23  ;;  %986 = vrot.lane.b32.xlu0 %v2558_v43, %s2178_s23 }
 0x172   : > { %v492_v40 = vpop.permute.xlu1 %491  ;;  %v490_v41 = vpop.permute.xlu0 %489 }
 0x173   : > { %v497_v42 = vsel %vm493_vm10, %v490_v41, %v492_v40  ;;  %v496_v44 = vsel %vm493_vm10, %v488_v37, %v490_v41 }
 0x174   : > { %1404 = vmatprep.subr.mxu1 %v497_v42 }
 0x175   : > { %949 = vrot.lane.b32.xlu1 %v2453_v0, %s2179_s27  ;;  %947 = vrot.lane.b32.xlu0 %v2464_v3, %s2179_s27 }
 0x176   : > { %1405 = vmatpush1.msra.mxu1 %v496_v44  ;;  %v484_v45 = vpop.permute.xlu0 %483  ;;  %v453_v46 = vpop.permute.xlu1 %452 }
 0x177   : > { %v494_v47 = vsel %vm493_vm10, %v484_v45, %v486_v38  ;;  %vm856_vm10 = vcmask 56320  }
 0x178   : > { %1334 = vmatpush1.msra.mxu0 %v494_v47 }
 0x179   : > { %953 = vrot.lane.b32.xlu1 %v2558_v43, %s2179_s27  ;;  %951 = vrot.lane.b32.xlu0 %v2461_v2, %s2179_s27 }
 0x17a   : > { %v455_v48 = vpop.permute.xlu0 %454  ;;  %v457_v49 = vpop.permute.xlu1 %456 }
 0x17b   : > { %v462_v50 = vsel %vm460_vm11, %v453_v46, %v455_v48  ;;  %v463_v55 = vsel %vm460_vm11, %v455_v48, %v457_v49 }
 0x17c   : > { %1335 = vmatprep.subr.mxu0 %v462_v50 }
 0x17d   : > { %914 = vrot.lane.b32.xlu1 %v2464_v3, %s2180_s12  ;;  %945 = vrot.lane.b32.xlu0 %v2456_v1, %s2179_s27 }
 0x17e   : > { %v459_v51 = vpop.permute.xlu0 %458  ;;  %v451_v52 = vpop.permute.xlu1 %450 }
 0x17f   : > { %v461_v53 = vsel %vm460_vm11, %v451_v52, %v453_v46  ;;  %v464_v54 = vsel %vm460_vm11, %v457_v49, %v459_v51 }
 0x180   : > { %1336 = vmatpush1.msra.mxu0 %v461_v53  ;;  %1406 = vmatprep.subr.mxu1 %v464_v54 }
 0x181   : > { %918 = vrot.lane.b32.xlu1 %v2461_v2, %s2180_s12  ;;  %916 = vrot.lane.b32.xlu0 %v2453_v0, %s2180_s12 }
 0x182   : > { %1407 = vmatpush1.msra.mxu1 %v463_v55 }
 0x183   : > { %v422_v56 = vpop.permute.xlu1 %421  ;;  %v420_v57 = vpop.permute.xlu0 %419 }
 0x184   : > { %v429_v58 = vsel %vm427_vm12, %v420_v57, %v422_v56 }
 0x185   : > { %1337 = vmatprep.subr.mxu0 %v429_v58  ;;  %912 = vrot.lane.b32.xlu1 %v2456_v1, %s2180_s12 }
 0x186   : > { %920 = vrot.lane.b32.xlu0 %v2558_v43, %s2180_s12  ;;  %v1200_v43 = vld [vmem:[#allocation5 + $0x8] sm:$0xff] }
 0x187   : > { %v426_v59 = vpop.permute.xlu1 %425  ;;  %v424_v60 = vpop.permute.xlu0 %423  ;;  %1753 = vmatprep.mubr.msk.f32.mxu0 %vm1309_vm14, %v1200_v43  ;;  %1754 = vmatprep.mubr.msk.f32.mxu1 %vm1309_vm14, %v1200_v43 }
 0x188   : > { %v431_v61 = vsel %vm427_vm12, %v424_v60, %v426_v59  ;;  %v430_v62 = vsel %vm427_vm12, %v422_v56, %v424_v60 }
 0x189   : > { %1408 = vmatprep.subr.mxu1 %v431_v61  ;;  %883 = vrot.lane.b32.xlu1 %v2464_v3, %s2181_s21 }
 0x18a   : > { %881 = vrot.lane.b32.xlu0 %v2456_v1, %s2181_s21  ;;  %1409 = vmatpush1.msra.mxu1 %v430_v62 }
 0x18b   : > { %v418_v63 = vpop.permute.xlu0 %417  ;;  %v387_v5 = vpop.permute.xlu1 %386 }
 0x18c   : > { %v428_v6 = vsel %vm427_vm12, %v418_v63, %v420_v57 }
 0x18d   : > { %1338 = vmatpush1.msra.mxu0 %v428_v6  ;;  %887 = vrot.lane.b32.xlu1 %v2461_v2, %s2181_s21 }
 0x18e   : > { %885 = vrot.lane.b32.xlu0 %v2453_v0, %s2181_s21 }
 0x18f   : > { %v389_v7 = vpop.permute.xlu0 %388  ;;  %v391_v8 = vpop.permute.xlu1 %390 }
 0x190   : > { %v396_v9 = vsel %vm394_vm13, %v387_v5, %v389_v7  ;;  %v397_v14 = vsel %vm394_vm13, %v389_v7, %v391_v8 }
 0x191   : > { %1339 = vmatprep.subr.mxu0 %v396_v9  ;;  %848 = vrot.lane.b32.xlu1 %v2456_v1, %s2182_s11 }
 0x192   : > { %879 = vrot.lane.b32.xlu0 %v2469_v4, %s2181_s21 }
 0x193   : > { %v393_v10 = vpop.permute.xlu0 %392  ;;  %v385_v11 = vpop.permute.xlu1 %384 }
 0x194   : > { %v395_v12 = vsel %vm394_vm13, %v385_v11, %v387_v5  ;;  %v398_v13 = vsel %vm394_vm13, %v391_v8, %v393_v10 }
 0x195   : > { %1340 = vmatpush1.msra.mxu0 %v395_v12  ;;  %1410 = vmatprep.subr.mxu1 %v398_v13 }
 0x196   : > { %852 = vrot.lane.b32.xlu1 %v2453_v0, %s2182_s11  ;;  %850 = vrot.lane.b32.xlu0 %v2464_v3, %s2182_s11 }
 0x197   : > { %1411 = vmatpush1.msra.mxu1 %v397_v14  ;;  %v356_v15 = vpop.permute.xlu1 %355  ;;  %v354_v16 = vpop.permute.xlu0 %353 }
 0x198   : > { %v363_v17 = vsel %vm361_vm15, %v354_v16, %v356_v15 }
 0x199   : > { %1341 = vmatprep.subr.mxu0 %v363_v17 }
 0x19a   : > { %846 = vrot.lane.b32.xlu1 %v2469_v4, %s2182_s11  ;;  %854 = vrot.lane.b32.xlu0 %v2461_v2, %s2182_s11 }
 0x19b   : > { %v360_v18 = vpop.permute.xlu1 %359  ;;  %v358_v19 = vpop.permute.xlu0 %357 }
 0x19c   : > { %v365_v20 = vsel %vm361_vm15, %v358_v19, %v360_v18  ;;  %v364_v21 = vsel %vm361_vm15, %v356_v15, %v358_v19 }
 0x19d   : > { %1412 = vmatprep.subr.mxu1 %v365_v20 }
 0x19e   : > { %1413 = vmatpush1.msra.mxu1 %v364_v21 }
 0x19f   : > { %v1179_v22 = vpop.permute.xlu1 %1178  ;;  %v352_v23 = vpop.permute.xlu0 %351  ;;  %1414 = vmatprep.subr.mxu1 %v2453_v0 }
 0x1a0   : > { %v362_v24 = vsel %vm361_vm15, %v352_v23, %v354_v16  ;;  %1415 = vmatpush1.msra.mxu1 %v2464_v3 }
 0x1a1   : > { %1342 = vmatpush1.msra.mxu0 %v362_v24 }
 0x1a2   : > { %1343 = vmatprep.subr.mxu0 %v2456_v1 }
 0x1a3   : > { %v1183_v2 = vpop.permute.xlu1 %1182  ;;  %v1181_v25 = vpop.permute.xlu0 %1180  ;;  %1344 = vmatpush1.msra.mxu0 %v2469_v4 }
 0x1a4   : > { %v1188_v26 = vsel %vm1186_vm0, %v1179_v22, %v1181_v25  ;;  %v1189_v0 = vsel %vm1186_vm0, %v1181_v25, %v1183_v2 }
 0x1a5   : > { %1355 = vmatprep.subr.mxu0 %v1188_v26 }
 0x1a7   : > { %v1177_v27 = vpop.permute.xlu1 %1176  ;;  %v1185_v28 = vpop.permute.xlu0 %1184 }
 0x1a8   : > { %v1187_v29 = vsel %vm1186_vm0, %v1177_v27, %v1179_v22  ;;  %v1190_v30 = vsel %vm1186_vm0, %v1183_v2, %v1185_v28 }
 0x1a9   : > { %1356 = vmatpush2.msra.mxu0 %v1187_v29  ;;  %1426 = vmatprep.subr.mxu1 %v1190_v30 }
 0x1aa   : > { %1427 = vmatpush2.msra.mxu1 %v1189_v0 }
 0x1ab   : > { %v1148_v3 = vpop.permute.xlu1 %1147  ;;  %v1146_v31 = vpop.permute.xlu0 %1145 }
 0x1ac   : > { %v1155_v32 = vsel %vm1153_vm1, %v1146_v31, %v1148_v3 }
 0x1ad   : > { %1357 = vmatprep.subr.mxu0 %v1155_v32 }
 0x1af   : > { %v1152_v1 = vpop.permute.xlu1 %1151  ;;  %v1150_v33 = vpop.permute.xlu0 %1149 }
 0x1b0   : > { %v1157_v34 = vsel %vm1153_vm1, %v1150_v33, %v1152_v1  ;;  %v1156_v35 = vsel %vm1153_vm1, %v1148_v3, %v1150_v33 }
 0x1b1   : > { %1428 = vmatprep.subr.mxu1 %v1157_v34 }
 0x1b2   : > { %1429 = vmatpush2.msra.mxu1 %v1156_v35 }
 0x1b3   : > { %v1113_v4 = vpop.permute.xlu1 %1112  ;;  %v1144_v36 = vpop.permute.xlu0 %1143 }
 0x1b4   : > { %v1154_v37 = vsel %vm1153_vm1, %v1144_v36, %v1146_v31 }
 0x1b5   : > { %1358 = vmatpush2.msra.mxu0 %v1154_v37 }
 0x1b7   : > { %v1117_v38 = vpop.permute.xlu1 %1116  ;;  %v1115_v39 = vpop.permute.xlu0 %1114 }
 0x1b8   : > { %v1122_v40 = vsel %vm1120_vm2, %v1113_v4, %v1115_v39  ;;  %v1123_v46 = vsel %vm1120_vm2, %v1115_v39, %v1117_v38 }
 0x1b9   : > { %1359 = vmatprep.subr.mxu0 %v1122_v40 }
 0x1bb   : > { %v1111_v41 = vpop.permute.xlu1 %1110  ;;  %v1119_v42 = vpop.permute.xlu0 %1118 }
 0x1bc   : > { %v1121_v44 = vsel %vm1120_vm2, %v1111_v41, %v1113_v4  ;;  %v1124_v45 = vsel %vm1120_vm2, %v1117_v38, %v1119_v42 }
 0x1bd   : > { %1360 = vmatpush2.msra.mxu0 %v1121_v44  ;;  %1430 = vmatprep.subr.mxu1 %v1124_v45 }
 0x1be   : > { %1431 = vmatpush2.msra.mxu1 %v1123_v46 }
 0x1bf   : > { %v1082_v47 = vpop.permute.xlu1 %1081  ;;  %v1080_v48 = vpop.permute.xlu0 %1079 }
 0x1c0   : > { %v1089_v49 = vsel %vm1087_vm3, %v1080_v48, %v1082_v47 }
 0x1c1   : > { %1361 = vmatprep.subr.mxu0 %v1089_v49 }
 0x1c3   : > { %v1086_v50 = vpop.permute.xlu1 %1085  ;;  %v1084_v51 = vpop.permute.xlu0 %1083 }
 0x1c4   : > { %v1091_v52 = vsel %vm1087_vm3, %v1084_v51, %v1086_v50  ;;  %v1090_v53 = vsel %vm1087_vm3, %v1082_v47, %v1084_v51 }
 0x1c5   : > { %1432 = vmatprep.subr.mxu1 %v1091_v52  ;;  %v1199_v52 = vld [vmem:[#allocation5] sm:$0xff] }
 0x1c6   : > { %1433 = vmatpush2.msra.mxu1 %v1090_v53 }
 0x1c7   : > { %v1047_v54 = vpop.permute.xlu1 %1046  ;;  %v1078_v55 = vpop.permute.xlu0 %1077 }
 0x1c8   : > { %v1088_v56 = vsel %vm1087_vm3, %v1078_v55, %v1080_v48 }
 0x1c9   : > { %1362 = vmatpush2.msra.mxu0 %v1088_v56 }
 0x1cb   : > { %v1051_v57 = vpop.permute.xlu1 %1050  ;;  %v1049_v58 = vpop.permute.xlu0 %1048 }
 0x1cc   : > { %v1056_v59 = vsel %vm1054_vm4, %v1047_v54, %v1049_v58  ;;  %v1057_v5 = vsel %vm1054_vm4, %v1049_v58, %v1051_v57 }
 0x1cd   : > { %1363 = vmatprep.subr.mxu0 %v1056_v59 }
 0x1cf   : > { %v1045_v60 = vpop.permute.xlu1 %1044  ;;  %v1053_v61 = vpop.permute.xlu0 %1052 }
 0x1d0   : > { %v1055_v62 = vsel %vm1054_vm4, %v1045_v60, %v1047_v54  ;;  %v1058_v63 = vsel %vm1054_vm4, %v1051_v57, %v1053_v61 }
 0x1d1   : > { %1364 = vmatpush2.msra.mxu0 %v1055_v62  ;;  %1434 = vmatprep.subr.mxu1 %v1058_v63 }
 0x1d2   : > { %1435 = vmatpush2.msra.mxu1 %v1057_v5 }
 0x1d3   : > { %v1016_v6 = vpop.permute.xlu1 %1015  ;;  %v1014_v43 = vpop.permute.xlu0 %1013 }
 0x1d4   : > { %v1023_v7 = vsel %vm1021_vm5, %v1014_v43, %v1016_v6 }
 0x1d5   : > { %1365 = vmatprep.subr.mxu0 %v1023_v7 }
 0x1d7   : > { %v1020_v8 = vpop.permute.xlu1 %1019  ;;  %v1018_v9 = vpop.permute.xlu0 %1017 }
 0x1d8   : > { %v1025_v10 = vsel %vm1021_vm5, %v1018_v9, %v1020_v8  ;;  %v1024_v11 = vsel %vm1021_vm5, %v1016_v6, %v1018_v9 }
 0x1d9   : > { %1436 = vmatprep.subr.mxu1 %v1025_v10 }
 0x1da   : > { %1437 = vmatpush2.msra.mxu1 %v1024_v11 }
 0x1db   : > { %v981_v12 = vpop.permute.xlu1 %980  ;;  %v1012_v13 = vpop.permute.xlu0 %1011 }
 0x1dc   : > { %v1022_v14 = vsel %vm1021_vm5, %v1012_v13, %v1014_v43 }
 0x1dd   : > { %1366 = vmatpush2.msra.mxu0 %v1022_v14 }
 0x1df   : > { %v985_v15 = vpop.permute.xlu1 %984  ;;  %v983_v16 = vpop.permute.xlu0 %982 }
 0x1e0   : > { %v990_v17 = vsel %vm988_vm6, %v981_v12, %v983_v16  ;;  %v991_v22 = vsel %vm988_vm6, %v983_v16, %v985_v15 }
 0x1e1   : > { %1367 = vmatprep.subr.mxu0 %v990_v17 }
 0x1e3   : > { %v979_v18 = vpop.permute.xlu1 %978  ;;  %v987_v19 = vpop.permute.xlu0 %986 }
 0x1e4   : > { %v989_v20 = vsel %vm988_vm6, %v979_v18, %v981_v12  ;;  %v992_v21 = vsel %vm988_vm6, %v985_v15, %v987_v19 }
 0x1e5   : > { %1368 = vmatpush2.msra.mxu0 %v989_v20  ;;  %1438 = vmatprep.subr.mxu1 %v992_v21 }
 0x1e6   : > { %1439 = vmatpush2.msra.mxu1 %v991_v22 }
 0x1e7   : > { %v950_v23 = vpop.permute.xlu1 %949  ;;  %v948_v24 = vpop.permute.xlu0 %947 }
 0x1e8   : > { %v957_v2 = vsel %vm955_vm7, %v948_v24, %v950_v23 }
 0x1e9   : > { %1369 = vmatprep.subr.mxu0 %v957_v2 }
 0x1eb   : > { %v954_v25 = vpop.permute.xlu1 %953  ;;  %v952_v26 = vpop.permute.xlu0 %951 }
 0x1ec   : > { %v959_v27 = vsel %vm955_vm7, %v952_v26, %v954_v25  ;;  %v958_v28 = vsel %vm955_vm7, %v950_v23, %v952_v26 }
 0x1ed   : > { %1440 = vmatprep.subr.mxu1 %v959_v27 }
 0x1ee   : > { %1441 = vmatpush2.msra.mxu1 %v958_v28 }
 0x1ef   : > { %v915_v29 = vpop.permute.xlu1 %914  ;;  %v946_v30 = vpop.permute.xlu0 %945 }
 0x1f0   : > { %v956_v0 = vsel %vm955_vm7, %v946_v30, %v948_v24 }
 0x1f1   : > { %1370 = vmatpush2.msra.mxu0 %v956_v0 }
 0x1f3   : > { %v919_v3 = vpop.permute.xlu1 %918  ;;  %v917_v31 = vpop.permute.xlu0 %916 }
 0x1f4   : > { %v924_v32 = vsel %vm922_vm8, %v915_v29, %v917_v31  ;;  %v925_v4 = vsel %vm922_vm8, %v917_v31, %v919_v3 }
 0x1f5   : > { %1371 = vmatprep.subr.mxu0 %v924_v32 }
 0x1f7   : > { %v913_v1 = vpop.permute.xlu1 %912 }
 0x1f8   : > { %v921_v33 = vpop.permute.xlu0 %920  ;;  %v923_v34 = vsel %vm922_vm8, %v913_v1, %v915_v29 }
 0x1f9   : > { %1372 = vmatpush2.msra.mxu0 %v923_v34  ;;  %v926_v35 = vsel %vm922_vm8, %v919_v3, %v921_v33 }
 0x1fa   : > { %1442 = vmatprep.subr.mxu1 %v926_v35 }
 0x1fb   : > { %1443 = vmatpush2.msra.mxu1 %v925_v4  ;;  %v884_v36 = vpop.permute.xlu1 %883 }
 0x1fc   : > { %v882_v37 = vpop.permute.xlu0 %881 }
 0x1fd   : > { %v891_v38 = vsel %vm889_vm9, %v882_v37, %v884_v36 }
 0x1fe   : > { %1373 = vmatprep.subr.mxu0 %v891_v38 }
 0x1ff   : > { %v888_v39 = vpop.permute.xlu1 %887 }
 0x200   : > { %v886_v40 = vpop.permute.xlu0 %885 }
 0x201   : > { %v893_v41 = vsel %vm889_vm9, %v886_v40, %v888_v39  ;;  %v892_v42 = vsel %vm889_vm9, %v884_v36, %v886_v40 }
 0x202   : > { %1444 = vmatprep.subr.mxu1 %v893_v41 }
 0x203   : > { %1445 = vmatpush2.msra.mxu1 %v892_v42  ;;  %v849_v44 = vpop.permute.xlu1 %848 }
 0x204   : > { %v880_v45 = vpop.permute.xlu0 %879 }
 0x205   : > { %v890_v46 = vsel %vm889_vm9, %v880_v45, %v882_v37 }
 0x206   : > { %1374 = vmatpush2.msra.mxu0 %v890_v46 }
 0x208   : > { %v853_v47 = vpop.permute.xlu1 %852  ;;  %v851_v48 = vpop.permute.xlu0 %850 }
 0x209   : > { %v858_v49 = vsel %vm856_vm10, %v849_v44, %v851_v48  ;;  %v859_v55 = vsel %vm856_vm10, %v851_v48, %v853_v47 }
 0x20a   : > { %1375 = vmatprep.subr.mxu0 %v858_v49 }
 0x20c   : > { %v847_v50 = vpop.permute.xlu1 %846  ;;  %v855_v51 = vpop.permute.xlu0 %854 }
 0x20d   : > { %v857_v53 = vsel %vm856_vm10, %v847_v50, %v849_v44  ;;  %v860_v54 = vsel %vm856_vm10, %v853_v47, %v855_v51 }
 0x20e   : > { %1376 = vmatpush2.msra.mxu0 %v857_v53  ;;  %1446 = vmatprep.subr.mxu1 %v860_v54 }
 0x20f   : > { %1378 = vmatmul.mubr.f32.vlgmr.msra.gmra.mxu0 %v1199_v52  ;;  %1447 = vmatpush2.msra.mxu1 %v859_v55 }
 0x210   : > { %1449 = vmatmul.mubr.f32.vlgmr.msra.gmra.mxu1 %v1199_v52 }
 0x2cf   : > { %v1379_v56 = vpop.f32.mrf.mxu0  ;;  %1461 = sbr.rel (%p1746_p4) target bundleno = 726 (0x2d6), region = 56 }
 0x2d0   : > { %1455 = vst [vmem:[%s2420_s29] sm:$0xff] %v1379_v56  ;;  %v1450_v57 = vpop.f32.mrf.mxu1 }
 0x2d1   : > { %1457 = vst [vmem:[%s2420_s29 + $0x10] sm:$0xff] %v1450_v57  ;;  %v1381_v58 = vpop.f32.mrf.mxu0 }
 0x2d2   : > { %1456 = vst [vmem:[%s2420_s29 + $0x8] sm:$0xff] %v1381_v58  ;;  %v1452_v59 = vpop.f32.mrf.mxu1 }
 0x2d3   : > { %1458 = vst [vmem:[%s2420_s29 + $0x18] sm:$0xff] %v1452_v59 }
 0x2d4   : > { %vm1462_vm11 = vcmask 7168   ;;  %v2183_v60 = vmov 0.0  }
 0x2d5   : > { %1463 = vst.msk [vmem:[%s2378_s13] sm:$0xff] %vm1462_vm11, %v2183_v60  ;;  %1464 = vst.msk [vmem:[%s2383_s0] sm:$0xff] %vm1462_vm11, %v2183_v60 }
 0x2d6 PF: > { %v1467_v61 = vlaneseq  ;;  %s2793_s1 = scalar_lea.vmem [#allocation8], %s2357_s18  ;;  %vm1498_vm12 = vcmask 7168   ;;  %p1756_p4 = scmp.ne.s32.totalorder %s2136_s24, 1 }
 0x2d7   : > { %v1465_v63 = vld [vmem:[%s2793_s1] sm:$0xf] }
 0x2d8   : > { %v1468_v62 = vshrl.u32 %v1467_v61, 7 }
 0x2da   : > { %v1469_v5 = vsub.s32 0, %v1468_v62  ;;  %v1473_v6 = vsub.s32 1, %v1468_v62  ;;  %v1477_v43 = vsub.s32 2, %v1468_v62  ;;  %v1481_v7 = vsub.s32 3, %v1468_v62 }
 0x2dc   : > { %v1470_v8 = vrot.slane %v1465_v63, %v1469_v5  ;;  %v1474_v9 = vrot.slane %v1465_v63, %v1473_v6  ;;  %v1478_v10 = vrot.slane %v1465_v63, %v1477_v43  ;;  %v1482_v11 = vrot.slane %v1465_v63, %v1481_v7  ;;  %v1491_v25 = vld [vmem:[%s2378_s13] sm:$0xff] }
 0x2dd   : > { %v1500_v28 = vld [vmem:[%s2383_s0] sm:$0xff] }
 0x2de   : > { %v1487_v12 = vmul.f32 %v1470_v8, %v1379_v56  ;;  %v1488_v13 = vmul.f32 %v1474_v9, %v1381_v58  ;;  %v1489_v14 = vmul.f32 %v1478_v10, %v1450_v57  ;;  %v1490_v15 = vmul.f32 %v1482_v11, %v1452_v59 }
 0x2e0   : > { %v1492_v16 = vadd.f32 %v1488_v13, %v1487_v12  ;;  %v1501_v17 = vmul.f32 %v1487_v12, %v1379_v56  ;;  %v1502_v18 = vmul.f32 %v1488_v13, %v1381_v58  ;;  %v1503_v19 = vmul.f32 %v1489_v14, %v1450_v57 }
 0x2e1   : > { %v1504_v21 = vmul.f32 %v1490_v15, %v1452_v59 }
 0x2e2   : > { %v1493_v20 = vadd.f32 %v1492_v16, %v1489_v14  ;;  %v1505_v22 = vadd.f32 %v1502_v18, %v1501_v17 }
 0x2e4   : > { %v1494_v23 = vadd.f32 %v1493_v20, %v1490_v15  ;;  %v1506_v24 = vadd.f32 %v1505_v22, %v1503_v19 }
 0x2e6   : > { %1495 = vadd.xlane.f32.xlu0 %v1494_v23  ;;  %v1507_v2 = vadd.f32 %v1506_v24, %v1504_v21 }
 0x2ea   : > { %1508 = vadd.xlane.f32.xlu0 %v1507_v2 }
 0x36f   : > { %v1496_v26 = vpop.xlane.xlu0 %1495 }
 0x370   : > { %v1497_v27 = vadd.f32 %v1496_v26, %v1491_v25 }
 0x372   : > { %1499 = vst.msk [vmem:[%s2378_s13] sm:$0xff] %vm1498_vm12, %v1497_v27  ;;  %1515 = sbr.rel (%p1756_p4) target bundleno = 917 (0x395), region = 60 }
 0x373   : > { %v1509_v29 = vpop.xlane.xlu0 %1508 }
 0x374   : > { %v1510_v30 = vadd.f32 %v1509_v29, %v1500_v28 }
 0x376   : > { %1511 = vst.msk [vmem:[%s2383_s0] sm:$0xff] %vm1498_vm12, %v1510_v30 }
 0x379   : > { %v1516_v0 = vld [vmem:[%s2378_s13] sm:$0xff] }
 0x37a   : > { %v1517_v31 = vmul.f32 0.001953125, %v1516_v0 }
 0x37c   : > { %v1520_v1 = vmul.f32 %v1517_v31, %v1517_v31  ;;  %v1525_v35 = vsub.f32 0.0, %v1517_v31 }
 0x37d   : > { %v1518_v3 = vld [vmem:[%s2383_s0] sm:$0xff] }
 0x37e   : > { %v1519_v32 = vmul.f32 0.001953125, %v1518_v3 }
 0x380   : > { %v1521_v33 = vsub.f32 %v1519_v32, %v1520_v1 }
 0x382   : > { %v1522_v34 = vadd.f32 1e-05, %v1521_v33 }
 0x384   : > { %1918 = vrsqrt.f32 %v1522_v34 }
 0x391   : > { %v1919_v4 = vpop.eup %1918 }
 0x392   : > { %1524 = vst.msk [vmem:[%s2383_s0] sm:$0xff] %vm1498_vm12, %v1919_v4  ;;  %v1526_v36 = vmul.f32 %v1919_v4, %v1525_v35 }
 0x394   : > { %1527 = vst.msk [vmem:[%s2378_s13] sm:$0xff] %vm1498_vm12, %v1526_v36 }
 0x395 PF: > { %s2794_s18 = sld [smem:[#allocation26_spill]]  ;;  %s1758_s30 = sshll.u32 %s2136_s24, 2 }
 0x396   : > { %s1759_s6 = sshll.u32 %s2140_s25, 3  ;;  %s1553_s17 = sshll.u32 %s2420_s29, 4  ;;  %s1554_s17 = int_to_ptr.vmem [resolvable:$true] %s1553_s17 }
 0x397   : > { %s1549_s10 = sadd.s32 %s1759_s6, %s1758_s30  ;;  %s2795_s2 = sld [smem:[#allocation34_spill]] }
 0x398   : > { %s1760_s15 = sshll.u32 %s1549_s10, 7  ;;  %s2796_s0 = sand.u32 1, %s2116_s19  }
 0x399   : > { %s1529_s16 = scalar_lea.sflag [#allocation7], %s2796_s0  ;;  %s2026_s14 = scalar_lea.vmem %s1554_s17, 512 }
 0x39a   : > { %p2027_p8 = scmp.ne.s32.totalorder %s1554_s17, %s2026_s14  ;;  %s2184_s13 = smov [#allocation10]  }
 0x39b   : > { %p2797_p9 = scmp.ne.s32.totalorder %s2794_s18, 0  ;;  %s2030_s4 = sshll.u32 %s2184_s13, 4  ;;  %s2031_s4 = int_to_ptr.vmem [resolvable:$false] %s2030_s4 }
 0x39c   : > { %s2032_s24 = scalar_lea.vmem %s2031_s4, 1024  ;;  %p2033_p0 = scmp.lt.s32.totalorder %s1554_s17, %s2031_s4 }
 0x39d   : > { %s1551_s5 = scalar_lea.hbm %s2795_s2, %s1760_s15  ;;  %p2028_p10 = pnand %p2027_p8, %p2797_p9 }
 0x39e   : > { %p2034_p3 = scmp.lt.s32.totalorder %s2032_s24, %s2026_s14 }
 0x39f   : > { %p2029_p13 = pneg %p2028_p10 }
 0x3a0   : > { %p2035_p1 = por %p2034_p3, %p2033_p0 }
 0x3a2   : > { %p2036_p11 = pnand %p2035_p1, %p2029_p13 }
 0x3a4   : > { %2039 = shalt.err (!%p2036_p11)
}
 0x3a5   : > { %s2040_s25 = scalar_lea.hbm %s1551_s5, 512  ;;  %s2044_s22 = scalar_lea.hbm %s2795_s2, 2048 }
 0x3a6   : > { %p2041_p2 = scmp.ne.s32.totalorder %s1551_s5, %s2040_s25  ;;  %p2045_p12 = scmp.lt.s32.totalorder %s1551_s5, %s2795_s2 }
 0x3a7   : > { %p2046_p6 = scmp.lt.s32.totalorder %s2044_s22, %s2040_s25 }
 0x3a8   : > { %p2042_p5 = pnand %p2041_p2, %p2797_p9 }
 0x3a9   : > { %p2047_p4 = por %p2046_p6, %p2045_p12 }
 0x3aa   : > { %p2043_p7 = pneg %p2042_p5 }
 0x3ac   : > { %p2048_p8 = pnand %p2047_p4, %p2043_p7 }
 0x3ae   : > { %2051 = shalt.err (!%p2048_p8)
}
 0x3af   : > { %1781 = dma.vmem_to_hbm [thread:$0]  (%p2797_p9), %s1554_s17, 512, %s1551_s5, %s1529_s16  }
 0x3b0 PF: > { %s2798_s12 = sld [smem:[#allocation21_spill]]  ;;  %p1800_p10 = scmp.ge.s32.totalorder %s2152_s28, 2 }
 0x3b1   : > { %s2799_s21 = sld [smem:[#allocation27_spill]] }
 0x3b6   : > { %s1571_s11 = sand.u32 1, %s2798_s12  }
 0x3b7   : > { %p2800_p13 = scmp.ne.s32.totalorder %s2799_s21, 0  ;;  %s1572_s1 = scalar_lea.sflag [#allocation7], %s1571_s11 }
 0x3b9   : > { %p1792_p0 = pnand %p1800_p10, %p2800_p13 }
 0x3bb   : > { %p1793_p3 = pneg %p1792_p0 }
 0x3bd   : > { %2107 = dma.done.wait (%p1793_p3), %s1572_s1, 512  }
 0x3be   : > { %2109 = vsyncadd (%p1793_p3), %s1572_s1, 4294966784  ;;  %s23_s28 = sadd.s32 1, %s2152_s28   ;;  %s2801_s21 = sld [smem:[#allocation22_spill]] }
 0x3bf   : > { %p20_p1 = scmp.ge.s32.totalorder %s23_s28, 6   ;;  %s2802_s22 = sld [smem:[#allocation23_spill]] }
 0x3c0   : > { %s2803_s23 = sld [smem:[#allocation30_spill]]  ;;  %s2808_s18 = smov %s2116_s19 }
 0x3c1   : > { %s2804_s24 = sld [smem:[#allocation24_spill]]  ;;  %s2809_s19 = smov %s2120_s20 }
 0x3c2   : > { %s2805_s25 = sld [smem:[#allocation25_spill]]  ;;  %s2810_s20 = smov %s2333_s9 }
 0x3c3   : > { %s2806_s26 = sld [smem:[#allocation28_spill]]  ;;  %22 = sbr.rel (!%p20_p1) target bundleno = 17 (0x11), region = 133 }
 0x3c4   : > { %s2807_s27 = sld [smem:[#allocation29_spill]] }
 0x3c8   :  { %1591 = vsyncpa [#allocation6], 1 }
 0x3c9   :  { %1593 = vsyncpa [#allocation6 + $0x1], 1 }
 0x3ca   :  { %1594 = vsyncpa [#allocation9], 1 }
 0x3cb   :  { %1596 = vsyncpa [#allocation9 + $0x1], 1 }
 0x3cc   :  { %1597 = vsyncpa [#allocation7], 1 }
 0x3cd   :  { %1599 = vsyncpa [#allocation7 + $0x1], 1 }
 0x3ce   :  { %1600 = vsyncmov [#allocation4] }
 0x3d1   :  { %s1601_s9 = vpop.sfrf %1600 }
 0x3d2   :  { %p1763_p9 = scmp.ne.s32.totalorder %s1601_s9, 0 }
 0x3d4   :  { %1605 = shalt.err (%p1763_p9)  }
 0x3d5   :  { %1607 = vsyncmov [#allocation4 + $0x1] }
 0x3d8   :  { %s1608_s30 = vpop.sfrf %1607 }
 0x3d9   :  { %p1764_p11 = scmp.ne.s32.totalorder %s1608_s30, 0 }
 0x3db   :  { %1612 = shalt.err (%p1764_p11)  }

</bundles_post_ra>
